<compile_context>
chip_gen: v7x
topology: tpu7x:2x2x1
jax: 0.10.0
libtpu: 0.0.40
codegen_flags: <defaults>
</compile_context>

<pallas_src>
import functools

import jax
import jax.numpy as jnp
import numpy as np
from jax.experimental import pallas as pl
from jax.experimental.pallas import tpu as pltpu


def _round_up(n, m):
    return ((n + m - 1) // m) * m


# ----------------------------- Pallas kernel ------------------------------- #

def _encoder_kernel(xc_ref, w1_ref, bias_ref, w_ref, z_ref, *, Bp, T, H, GP):
    G = 3 * GP

    # ---------------- hoisted, off the serial recurrence path --------------- #
    # Layer-1 input projection for ALL timesteps in one MXU pass (time-major
    # rows, batch padded to the 8-sublane pitch). Bias row 0 already contains
    # b_ih1 with b_hh1's r/z columns folded in.
    gi1_all = (jnp.dot(xc_ref[...], w1_ref[...], preferred_element_type=jnp.float32)
               + bias_ref[0:1, :])                                   # (T*Bp, G)

    whh1 = w_ref[0:H, :]                                             # (H, G)
    wih2 = w_ref[H:2 * H, :]                                         # (H, G)
    whh2 = w_ref[2 * H:3 * H, :]                                     # (H, G)
    wlin = w_ref[3 * H:4 * H, 0:GP]                                  # (H, GP)

    # Pre-broadcast bias rows once (broadcast_in_dim is not CSE'd inside loops).
    b1h_n = jnp.broadcast_to(bias_ref[1:2, 0:GP], (Bp, GP))          # b_hh1[n]
    b2fold = jnp.broadcast_to(bias_ref[2:3, :], (Bp, G))             # rz: b_ih2+b_hh2 | n: b_hh2
    b2i_n = jnp.broadcast_to(bias_ref[3:4, 0:GP], (Bp, GP))          # b_ih2[n]

    h1 = jnp.zeros((Bp, H), jnp.float32)
    h2 = jnp.zeros((Bp, H), jnp.float32)

    # --------------------- fully unrolled recurrence ------------------------ #
    # TODO(synk): for large T / large B, switch to lax.fori_loop with time
    # chunking of gi1_all and add a "parallel" batch grid axis (v7x: 64 MiB
    # VMEM, 2 TensorCores).
    for t in range(T):
        # Layer-2 recurrent projection depends only on h2(t-1): issued at the
        # top of the step so it fully overlaps the layer-1 chain.
        gh2 = jnp.dot(h2, whh2, preferred_element_type=jnp.float32) + b2fold

        # ---- layer 1 GRU cell (input projection + r/z biases precomputed) --
        gi1 = gi1_all[t * Bp:(t + 1) * Bp, :]              # whole-tile view (Bp=8)
        gh1 = jnp.dot(h1, whh1, preferred_element_type=jnp.float32)
        rz1 = jax.nn.sigmoid(gi1[:, :2 * GP] + gh1[:, :2 * GP])
        r1 = rz1[:, :GP]
        z1 = rz1[:, GP:2 * GP]
        n1 = jnp.tanh(gi1[:, 2 * GP:] + r1 * (gh1[:, 2 * GP:] + b1h_n))
        h1 = (1.0 - z1[:, :H]) * n1[:, :H] + z1[:, :H] * h1

        # ---- layer 2 GRU cell: only gi2 (K=H matmul) on the critical path --
        gi2 = jnp.dot(h1, wih2, preferred_element_type=jnp.float32)
        rz2 = jax.nn.sigmoid(gi2[:, :2 * GP] + gh2[:, :2 * GP])
        r2 = rz2[:, :GP]
        z2 = rz2[:, GP:2 * GP]
        n2 = jnp.tanh(gi2[:, 2 * GP:] + b2i_n + r2 * gh2[:, 2 * GP:])
        h2 = (1.0 - z2[:, :H]) * n2[:, :H] + z2[:, :H] * h2

    # ---- final linear, written as a full lane-dense (Bp, GP) tile ----
    z_ref[...] = (jnp.dot(h2, wlin, preferred_element_type=jnp.float32)
                  + bias_ref[4:5, 0:GP])


# ------------------------- parameter preparation ---------------------------- #

def _pad_gates(w, H, GP):
    """(..., 3H) -> (..., 3*GP): each gate's H columns start a 128-lane group."""
    lead = w.shape[:-1]
    w3 = w.reshape(*lead, 3, H)
    w3 = jnp.pad(w3, [(0, 0)] * len(lead) + [(0, 0), (0, GP - H)])
    return w3.reshape(*lead, 3 * GP)


def prepare_params(params, *, input_size, cond_size, hidden_size, rep_size,
                   gate_pitch=None):
    """One-time host-side re-layout into the packed, lane-aligned kernel format."""
    H, R = hidden_size, rep_size
    GP = gate_pitch or _round_up(max(H, 1), 128)
    G = 3 * GP
    f32 = jnp.float32

    pg = lambda w: _pad_gates(jnp.asarray(w, f32), H, GP)

    # Fused layer-1 input weight for the (x | cond) rows.
    w1 = pg(params["wih1"])                                    # (Din+Dc, G)

    b1i, b1h = pg(params["bih1"]), pg(params["bhh1"])          # (1, G)
    whh1 = pg(params["whh1"])                                  # (H, G)
    wih2, whh2 = pg(params["wih2"]), pg(params["whh2"])        # (H, G)
    b2i, b2h = pg(params["bih2"]), pg(params["bhh2"])          # (1, G)

    # Bias slab (8, G): fold everything that is always summed.
    b1i_fold = b1i.at[:, :2 * GP].add(b1h[:, :2 * GP])         # r/z bias fold
    b2fold = jnp.concatenate(
        [b2i[:, :2 * GP] + b2h[:, :2 * GP], b2h[:, 2 * GP:]], axis=-1)
    bias = jnp.zeros((8, G), f32)
    bias = bias.at[0, :].set(b1i_fold[0])
    bias = bias.at[1, :GP].set(b1h[0, 2 * GP:])                # b_hh1[n]
    bias = bias.at[2, :].set(b2fold[0])
    bias = bias.at[3, :GP].set(b2i[0, 2 * GP:])                # b_ih2[n]
    bias = bias.at[4, :R].set(jnp.asarray(params["blin"], f32)[0])

    # Recurrent / output weight slab (4H, G): whh1 | wih2 | whh2 | wlin(pad).
    w_pack = jnp.zeros((4 * H, G), f32)
    w_pack = w_pack.at[0:H, :].set(whh1)
    w_pack = w_pack.at[H:2 * H, :].set(wih2)
    w_pack = w_pack.at[2 * H:3 * H, :].set(whh2)
    w_pack = w_pack.at[3 * H:4 * H, :R].set(jnp.asarray(params["wlin"], f32))

    return {"w1": w1, "bias": bias, "w_pack": w_pack, "gate_pitch": GP}


# --------------------------------- wrapper ----------------------------------- #

def encoder_forward(x, cond, prep, *, hidden_size, rep_size):
    """x: (B, T, input_size), cond: (B, T, cond_size) -> z: (B, rep_size)."""
    B, T, Din = x.shape
    Dc = cond.shape[-1]
    H, R, GP = hidden_size, rep_size, prep["gate_pitch"]
    Bp = _round_up(B, 8)                     # sublane-aligned batch

    # Time-major, batch-padded activations: (T*Bp, Din+Dc). Tiny; doing the
    # concat/pad here keeps the kernel argument (DMA) count at 4.
    xc = jnp.concatenate([x, cond], axis=-1).astype(jnp.float32)    # (B, T, D)
    xc = jnp.swapaxes(xc, 0, 1)                                     # (T, B, D)
    xc = jnp.pad(xc, ((0, 0), (0, Bp - B), (0, 0)))                 # (T, Bp, D)
    xc = xc.reshape(T * Bp, Din + Dc)

    kernel = functools.partial(_encoder_kernel, Bp=Bp, T=T, H=H, GP=GP)
    vmem = pl.BlockSpec(memory_space=pltpu.MemorySpace.VMEM)

    out = pl.pallas_call(
        kernel,
        out_shape=jax.ShapeDtypeStruct((Bp, GP), jnp.float32),
        in_specs=[vmem] * 4,
        out_specs=vmem,
    )(xc, prep["w1"], prep["bias"], prep["w_pack"])
    return out[:B, :R]


# --------------------------- pure-JAX reference ----------------------------- #

def _gru_step_ref(x, h, wih, whh, bih, bhh, H):
    """PyTorch nn.GRUCell semantics (gate order r, z, n), unpadded layout."""
    gi = x @ wih + bih
    gh = h @ whh + bhh
    r = jax.nn.sigmoid(gi[:, 0:H] + gh[:, 0:H])
    z = jax.nn.sigmoid(gi[:, H:2 * H] + gh[:, H:2 * H])
    n = jnp.tanh(gi[:, 2 * H:3 * H] + r * gh[:, 2 * H:3 * H])
    return (1.0 - z) * n + z * h


def encoder_reference(x, cond, params, *, hidden_size):
    xcat = jnp.concatenate([x, cond], axis=-1).astype(jnp.float32)
    B, T, _ = xcat.shape
    H = hidden_size
    h1 = jnp.zeros((B, H), jnp.float32)
    h2 = jnp.zeros((B, H), jnp.float32)
    for t in range(T):
        h1 = _gru_step_ref(xcat[:, t, :], h1, params["wih1"], params["whh1"],
                           params["bih1"], params["bhh1"], H)
        h2 = _gru_step_ref(h1, h2, params["wih2"], params["whh2"],
                           params["bih2"], params["bhh2"], H)
    return h2 @ params["wlin"] + params["blin"]


# --------------------------------- driver ----------------------------------- #

if __name__ == "__main__":
    # Module hyper-parameters (Encoder(layers=2, ..., cell='gru'))
    input_size = 6
    cond_size = 2
    hidden_size = 32
    rep_size = 16
    batch, seq = 4, 8

    key = jax.random.PRNGKey(0)
    ks = jax.random.split(key, 16)
    D = input_size + cond_size
    H, R = hidden_size, rep_size
    bound = 1.0 / np.sqrt(H)   # PyTorch GRUCell/Linear default init range

    def u(k, shape):
        return jax.random.uniform(k, shape, jnp.float32, -bound, bound)

    params = {
        # layer 1 GRU (stored transposed vs. PyTorch: (in, 3H), gate order r,z,n)
        "wih1": u(ks[0], (D, 3 * H)), "whh1": u(ks[1], (H, 3 * H)),
        "bih1": u(ks[2], (1, 3 * H)), "bhh1": u(ks[3], (1, 3 * H)),
        # layer 2 GRU
        "wih2": u(ks[4], (H, 3 * H)), "whh2": u(ks[5], (H, 3 * H)),
        "bih2": u(ks[6], (1, 3 * H)), "bhh2": u(ks[7], (1, 3 * H)),
        # final linear (hidden -> rep)
        "wlin": u(ks[8], (H, R)), "blin": u(ks[9], (1, R)),
    }

    x = jax.random.normal(ks[10], (batch, seq, input_size), jnp.float32)
    cond = jax.random.normal(ks[11], (batch, seq, cond_size), jnp.float32)

    prep = prepare_params(params, input_size=input_size, cond_size=cond_size,
                          hidden_size=H, rep_size=R)

    z = encoder_forward(x, cond, prep, hidden_size=H, rep_size=R)
    z = jax.block_until_ready(z)

    z_ref = encoder_reference(x, cond, params, hidden_size=H)
    np.testing.assert_allclose(np.asarray(z), np.asarray(z_ref),
                               rtol=1e-4, atol=1e-4)
    print("KERNEL_OK")
</pallas_src>

<mosaic_0001>
module attributes {stable_mosaic.version = 11 : i64} {
  func.func @_encoder_kernel(%arg0: memref<64x8xf32, #tpu.memory_space<vmem>>, %arg1: memref<8x384xf32, #tpu.memory_space<vmem>>, %arg2: memref<8x384xf32, #tpu.memory_space<vmem>>, %arg3: memref<128x384xf32, #tpu.memory_space<vmem>>, %arg4: memref<8x128xf32, #tpu.memory_space<vmem>>) attributes {dimension_semantics = [], scalar_prefetch = 0 : i64, scratch_operands = 0 : i64, tpu.core_type = #tpu.core_type<tc>} {
    %c0 = arith.constant 0 : index
    %c0_0 = arith.constant 0 : index
    %0 = vector.load %arg0[%c0, %c0_0] : memref<64x8xf32, #tpu.memory_space<vmem>>, vector<64x8xf32>
    %c0_1 = arith.constant 0 : index
    %c0_2 = arith.constant 0 : index
    %1 = vector.load %arg1[%c0_1, %c0_2] : memref<8x384xf32, #tpu.memory_space<vmem>>, vector<8x384xf32>
    %cst = arith.constant dense<0.000000e+00> : vector<64x384xf32>
    %2 = tpu.matmul %0, %1, %cst {dimension_numbers = #tpu.dot_dimension_numbers<[1], [0], [0], [1], [0, 0, 1, 1], [], []>} : vector<64x8xf32>, vector<8x384xf32>, vector<64x384xf32> -> vector<64x384xf32>
    %c0_3 = arith.constant 0 : index
    %c0_4 = arith.constant 0 : index
    %3 = vector.load %arg2[%c0_3, %c0_4] : memref<8x384xf32, #tpu.memory_space<vmem>>, vector<1x384xf32>
    %4 = vector.broadcast %3 : vector<1x384xf32> to vector<64x384xf32>
    %5 = arith.addf %2, %4 : vector<64x384xf32>
    %c0_5 = arith.constant 0 : index
    %c0_6 = arith.constant 0 : index
    %6 = vector.load %arg3[%c0_5, %c0_6] : memref<128x384xf32, #tpu.memory_space<vmem>>, vector<32x384xf32>
    %c32 = arith.constant 32 : index
    %c0_7 = arith.constant 0 : index
    %7 = vector.load %arg3[%c32, %c0_7] : memref<128x384xf32, #tpu.memory_space<vmem>>, vector<32x384xf32>
    %c64 = arith.constant 64 : index
    %c0_8 = arith.constant 0 : index
    %8 = vector.load %arg3[%c64, %c0_8] : memref<128x384xf32, #tpu.memory_space<vmem>>, vector<32x384xf32>
    %c96 = arith.constant 96 : index
    %c0_9 = arith.constant 0 : index
    %9 = vector.load %arg3[%c96, %c0_9] : memref<128x384xf32, #tpu.memory_space<vmem>>, vector<32x128xf32>
    %c1 = arith.constant 1 : index
    %c0_10 = arith.constant 0 : index
    %10 = vector.load %arg2[%c1, %c0_10] : memref<8x384xf32, #tpu.memory_space<vmem>>, vector<1x128xf32>
    %11 = vector.shape_cast %10 : vector<1x128xf32> to vector<1x128xf32>
    %12 = vector.broadcast %11 : vector<1x128xf32> to vector<8x128xf32>
    %c2 = arith.constant 2 : index
    %c0_11 = arith.constant 0 : index
    %13 = vector.load %arg2[%c2, %c0_11] : memref<8x384xf32, #tpu.memory_space<vmem>>, vector<1x384xf32>
    %14 = vector.shape_cast %13 : vector<1x384xf32> to vector<1x384xf32>
    %15 = vector.broadcast %14 : vector<1x384xf32> to vector<8x384xf32>
    %c3 = arith.constant 3 : index
    %c0_12 = arith.constant 0 : index
    %16 = vector.load %arg2[%c3, %c0_12] : memref<8x384xf32, #tpu.memory_space<vmem>>, vector<1x128xf32>
    %17 = vector.shape_cast %16 : vector<1x128xf32> to vector<1x128xf32>
    %18 = vector.broadcast %17 : vector<1x128xf32> to vector<8x128xf32>
    %cst_13 = arith.constant 0.000000e+00 : f32
    %19 = vector.broadcast %cst_13 : f32 to vector<8x32xf32>
    %cst_14 = arith.constant 0.000000e+00 : f32
    %20 = vector.broadcast %cst_14 : f32 to vector<8x32xf32>
    %cst_15 = arith.constant dense<0.000000e+00> : vector<8x384xf32>
    %21 = tpu.matmul %20, %8, %cst_15 {dimension_numbers = #tpu.dot_dimension_numbers<[1], [0], [0], [1], [0, 0, 1, 1], [], []>} : vector<8x32xf32>, vector<32x384xf32>, vector<8x384xf32> -> vector<8x384xf32>
    %22 = arith.addf %21, %15 : vector<8x384xf32>
    %23 = vector.extract_strided_slice %5 {offsets = [0, 0], sizes = [8, 384], strides = [1, 1]} : vector<64x384xf32> to vector<8x384xf32>
    %cst_16 = arith.constant dense<0.000000e+00> : vector<8x384xf32>
    %24 = tpu.matmul %19, %6, %cst_16 {dimension_numbers = #tpu.dot_dimension_numbers<[1], [0], [0], [1], [0, 0, 1, 1], [], []>} : vector<8x32xf32>, vector<32x384xf32>, vector<8x384xf32> -> vector<8x384xf32>
    %25 = vector.extract_strided_slice %23 {offsets = [0, 0], sizes = [8, 256], strides = [1, 1]} : vector<8x384xf32> to vector<8x256xf32>
    %26 = vector.extract_strided_slice %24 {offsets = [0, 0], sizes = [8, 256], strides = [1, 1]} : vector<8x384xf32> to vector<8x256xf32>
    %27 = arith.addf %25, %26 : vector<8x256xf32>
    %28 = arith.negf %27 : vector<8x256xf32>
    %29 = math.exp %28 : vector<8x256xf32>
    %cst_17 = arith.constant 1.000000e+00 : f32
    %30 = vector.broadcast %cst_17 : f32 to vector<8x256xf32>
    %31 = arith.addf %30, %29 : vector<8x256xf32>
    %32 = arith.divf %30, %31 : vector<8x256xf32>
    %33 = vector.extract_strided_slice %32 {offsets = [0, 0], sizes = [8, 128], strides = [1, 1]} : vector<8x256xf32> to vector<8x128xf32>
    %34 = vector.extract_strided_slice %32 {offsets = [0, 128], sizes = [8, 128], strides = [1, 1]} : vector<8x256xf32> to vector<8x128xf32>
    %35 = vector.extract_strided_slice %23 {offsets = [0, 256], sizes = [8, 128], strides = [1, 1]} : vector<8x384xf32> to vector<8x128xf32>
    %36 = vector.extract_strided_slice %24 {offsets = [0, 256], sizes = [8, 128], strides = [1, 1]} : vector<8x384xf32> to vector<8x128xf32>
    %37 = arith.addf %36, %12 : vector<8x128xf32>
    %38 = arith.mulf %33, %37 : vector<8x128xf32>
    %39 = arith.addf %35, %38 : vector<8x128xf32>
    %40 = math.tanh %39 : vector<8x128xf32>
    %41 = vector.extract_strided_slice %34 {offsets = [0, 0], sizes = [8, 32], strides = [1, 1]} : vector<8x128xf32> to vector<8x32xf32>
    %cst_18 = arith.constant 1.000000e+00 : f32
    %42 = vector.broadcast %cst_18 : f32 to vector<8x32xf32>
    %43 = arith.subf %42, %41 : vector<8x32xf32>
    %44 = vector.extract_strided_slice %40 {offsets = [0, 0], sizes = [8, 32], strides = [1, 1]} : vector<8x128xf32> to vector<8x32xf32>
    %45 = arith.mulf %43, %44 : vector<8x32xf32>
    %46 = vector.extract_strided_slice %34 {offsets = [0, 0], sizes = [8, 32], strides = [1, 1]} : vector<8x128xf32> to vector<8x32xf32>
    %47 = arith.mulf %46, %19 : vector<8x32xf32>
    %48 = arith.addf %45, %47 : vector<8x32xf32>
    %cst_19 = arith.constant dense<0.000000e+00> : vector<8x384xf32>
    %49 = tpu.matmul %48, %7, %cst_19 {dimension_numbers = #tpu.dot_dimension_numbers<[1], [0], [0], [1], [0, 0, 1, 1], [], []>} : vector<8x32xf32>, vector<32x384xf32>, vector<8x384xf32> -> vector<8x384xf32>
    %50 = vector.extract_strided_slice %49 {offsets = [0, 0], sizes = [8, 256], strides = [1, 1]} : vector<8x384xf32> to vector<8x256xf32>
    %51 = vector.extract_strided_slice %22 {offsets = [0, 0], sizes = [8, 256], strides = [1, 1]} : vector<8x384xf32> to vector<8x256xf32>
    %52 = arith.addf %50, %51 : vector<8x256xf32>
    %53 = arith.negf %52 : vector<8x256xf32>
    %54 = math.exp %53 : vector<8x256xf32>
    %cst_20 = arith.constant 1.000000e+00 : f32
    %55 = vector.broadcast %cst_20 : f32 to vector<8x256xf32>
    %56 = arith.addf %55, %54 : vector<8x256xf32>
    %57 = arith.divf %55, %56 : vector<8x256xf32>
    %58 = vector.extract_strided_slice %57 {offsets = [0, 0], sizes = [8, 128], strides = [1, 1]} : vector<8x256xf32> to vector<8x128xf32>
    %59 = vector.extract_strided_slice %57 {offsets = [0, 128], sizes = [8, 128], strides = [1, 1]} : vector<8x256xf32> to vector<8x128xf32>
    %60 = vector.extract_strided_slice %49 {offsets = [0, 256], sizes = [8, 128], strides = [1, 1]} : vector<8x384xf32> to vector<8x128xf32>
    %61 = arith.addf %60, %18 : vector<8x128xf32>
    %62 = vector.extract_strided_slice %22 {offsets = [0, 256], sizes = [8, 128], strides = [1, 1]} : vector<8x384xf32> to vector<8x128xf32>
    %63 = arith.mulf %58, %62 : vector<8x128xf32>
    %64 = arith.addf %61, %63 : vector<8x128xf32>
    %65 = math.tanh %64 : vector<8x128xf32>
    %66 = vector.extract_strided_slice %59 {offsets = [0, 0], sizes = [8, 32], strides = [1, 1]} : vector<8x128xf32> to vector<8x32xf32>
    %cst_21 = arith.constant 1.000000e+00 : f32
    %67 = vector.broadcast %cst_21 : f32 to vector<8x32xf32>
    %68 = arith.subf %67, %66 : vector<8x32xf32>
    %69 = vector.extract_strided_slice %65 {offsets = [0, 0], sizes = [8, 32], strides = [1, 1]} : vector<8x128xf32> to vector<8x32xf32>
    %70 = arith.mulf %68, %69 : vector<8x32xf32>
    %71 = vector.extract_strided_slice %59 {offsets = [0, 0], sizes = [8, 32], strides = [1, 1]} : vector<8x128xf32> to vector<8x32xf32>
    %72 = arith.mulf %71, %20 : vector<8x32xf32>
    %73 = arith.addf %70, %72 : vector<8x32xf32>
    %cst_22 = arith.constant dense<0.000000e+00> : vector<8x384xf32>
    %74 = tpu.matmul %73, %8, %cst_22 {dimension_numbers = #tpu.dot_dimension_numbers<[1], [0], [0], [1], [0, 0, 1, 1], [], []>} : vector<8x32xf32>, vector<32x384xf32>, vector<8x384xf32> -> vector<8x384xf32>
    %75 = arith.addf %74, %15 : vector<8x384xf32>
    %76 = vector.extract_strided_slice %5 {offsets = [8, 0], sizes = [8, 384], strides = [1, 1]} : vector<64x384xf32> to vector<8x384xf32>
    %cst_23 = arith.constant dense<0.000000e+00> : vector<8x384xf32>
    %77 = tpu.matmul %48, %6, %cst_23 {dimension_numbers = #tpu.dot_dimension_numbers<[1], [0], [0], [1], [0, 0, 1, 1], [], []>} : vector<8x32xf32>, vector<32x384xf32>, vector<8x384xf32> -> vector<8x384xf32>
    %78 = vector.extract_strided_slice %76 {offsets = [0, 0], sizes = [8, 256], strides = [1, 1]} : vector<8x384xf32> to vector<8x256xf32>
    %79 = vector.extract_strided_slice %77 {offsets = [0, 0], sizes = [8, 256], strides = [1, 1]} : vector<8x384xf32> to vector<8x256xf32>
    %80 = arith.addf %78, %79 : vector<8x256xf32>
    %81 = arith.negf %80 : vector<8x256xf32>
    %82 = math.exp %81 : vector<8x256xf32>
    %cst_24 = arith.constant 1.000000e+00 : f32
    %83 = vector.broadcast %cst_24 : f32 to vector<8x256xf32>
    %84 = arith.addf %83, %82 : vector<8x256xf32>
    %85 = arith.divf %83, %84 : vector<8x256xf32>
    %86 = vector.extract_strided_slice %85 {offsets = [0, 0], sizes = [8, 128], strides = [1, 1]} : vector<8x256xf32> to vector<8x128xf32>
    %87 = vector.extract_strided_slice %85 {offsets = [0, 128], sizes = [8, 128], strides = [1, 1]} : vector<8x256xf32> to vector<8x128xf32>
    %88 = vector.extract_strided_slice %76 {offsets = [0, 256], sizes = [8, 128], strides = [1, 1]} : vector<8x384xf32> to vector<8x128xf32>
    %89 = vector.extract_strided_slice %77 {offsets = [0, 256], sizes = [8, 128], strides = [1, 1]} : vector<8x384xf32> to vector<8x128xf32>
    %90 = arith.addf %89, %12 : vector<8x128xf32>
    %91 = arith.mulf %86, %90 : vector<8x128xf32>
    %92 = arith.addf %88, %91 : vector<8x128xf32>
    %93 = math.tanh %92 : vector<8x128xf32>
    %94 = vector.extract_strided_slice %87 {offsets = [0, 0], sizes = [8, 32], strides = [1, 1]} : vector<8x128xf32> to vector<8x32xf32>
    %cst_25 = arith.constant 1.000000e+00 : f32
    %95 = vector.broadcast %cst_25 : f32 to vector<8x32xf32>
    %96 = arith.subf %95, %94 : vector<8x32xf32>
    %97 = vector.extract_strided_slice %93 {offsets = [0, 0], sizes = [8, 32], strides = [1, 1]} : vector<8x128xf32> to vector<8x32xf32>
    %98 = arith.mulf %96, %97 : vector<8x32xf32>
    %99 = vector.extract_strided_slice %87 {offsets = [0, 0], sizes = [8, 32], strides = [1, 1]} : vector<8x128xf32> to vector<8x32xf32>
    %100 = arith.mulf %99, %48 : vector<8x32xf32>
    %101 = arith.addf %98, %100 : vector<8x32xf32>
    %cst_26 = arith.constant dense<0.000000e+00> : vector<8x384xf32>
    %102 = tpu.matmul %101, %7, %cst_26 {dimension_numbers = #tpu.dot_dimension_numbers<[1], [0], [0], [1], [0, 0, 1, 1], [], []>} : vector<8x32xf32>, vector<32x384xf32>, vector<8x384xf32> -> vector<8x384xf32>
    %103 = vector.extract_strided_slice %102 {offsets = [0, 0], sizes = [8, 256], strides = [1, 1]} : vector<8x384xf32> to vector<8x256xf32>
    %104 = vector.extract_strided_slice %75 {offsets = [0, 0], sizes = [8, 256], strides = [1, 1]} : vector<8x384xf32> to vector<8x256xf32>
    %105 = arith.addf %103, %104 : vector<8x256xf32>
    %106 = arith.negf %105 : vector<8x256xf32>
    %107 = math.exp %106 : vector<8x256xf32>
    %cst_27 = arith.constant 1.000000e+00 : f32
    %108 = vector.broadcast %cst_27 : f32 to vector<8x256xf32>
    %109 = arith.addf %108, %107 : vector<8x256xf32>
    %110 = arith.divf %108, %109 : vector<8x256xf32>
    %111 = vector.extract_strided_slice %110 {offsets = [0, 0], sizes = [8, 128], strides = [1, 1]} : vector<8x256xf32> to vector<8x128xf32>
    %112 = vector.extract_strided_slice %110 {offsets = [0, 128], sizes = [8, 128], strides = [1, 1]} : vector<8x256xf32> to vector<8x128xf32>
    %113 = vector.extract_strided_slice %102 {offsets = [0, 256], sizes = [8, 128], strides = [1, 1]} : vector<8x384xf32> to vector<8x128xf32>
    %114 = arith.addf %113, %18 : vector<8x128xf32>
    %115 = vector.extract_strided_slice %75 {offsets = [0, 256], sizes = [8, 128], strides = [1, 1]} : vector<8x384xf32> to vector<8x128xf32>
    %116 = arith.mulf %111, %115 : vector<8x128xf32>
    %117 = arith.addf %114, %116 : vector<8x128xf32>
    %118 = math.tanh %117 : vector<8x128xf32>
    %119 = vector.extract_strided_slice %112 {offsets = [0, 0], sizes = [8, 32], strides = [1, 1]} : vector<8x128xf32> to vector<8x32xf32>
    %cst_28 = arith.constant 1.000000e+00 : f32
    %120 = vector.broadcast %cst_28 : f32 to vector<8x32xf32>
    %121 = arith.subf %120, %119 : vector<8x32xf32>
    %122 = vector.extract_strided_slice %118 {offsets = [0, 0], sizes = [8, 32], strides = [1, 1]} : vector<8x128xf32> to vector<8x32xf32>
    %123 = arith.mulf %121, %122 : vector<8x32xf32>
    %124 = vector.extract_strided_slice %112 {offsets = [0, 0], sizes = [8, 32], strides = [1, 1]} : vector<8x128xf32> to vector<8x32xf32>
    %125 = arith.mulf %124, %73 : vector<8x32xf32>
    %126 = arith.addf %123, %125 : vector<8x32xf32>
    %cst_29 = arith.constant dense<0.000000e+00> : vector<8x384xf32>
    %127 = tpu.matmul %126, %8, %cst_29 {dimension_numbers = #tpu.dot_dimension_numbers<[1], [0], [0], [1], [0, 0, 1, 1], [], []>} : vector<8x32xf32>, vector<32x384xf32>, vector<8x384xf32> -> vector<8x384xf32>
    %128 = arith.addf %127, %15 : vector<8x384xf32>
    %129 = vector.extract_strided_slice %5 {offsets = [16, 0], sizes = [8, 384], strides = [1, 1]} : vector<64x384xf32> to vector<8x384xf32>
    %cst_30 = arith.constant dense<0.000000e+00> : vector<8x384xf32>
    %130 = tpu.matmul %101, %6, %cst_30 {dimension_numbers = #tpu.dot_dimension_numbers<[1], [0], [0], [1], [0, 0, 1, 1], [], []>} : vector<8x32xf32>, vector<32x384xf32>, vector<8x384xf32> -> vector<8x384xf32>
    %131 = vector.extract_strided_slice %129 {offsets = [0, 0], sizes = [8, 256], strides = [1, 1]} : vector<8x384xf32> to vector<8x256xf32>
    %132 = vector.extract_strided_slice %130 {offsets = [0, 0], sizes = [8, 256], strides = [1, 1]} : vector<8x384xf32> to vector<8x256xf32>
    %133 = arith.addf %131, %132 : vector<8x256xf32>
    %134 = arith.negf %133 : vector<8x256xf32>
    %135 = math.exp %134 : vector<8x256xf32>
    %cst_31 = arith.constant 1.000000e+00 : f32
    %136 = vector.broadcast %cst_31 : f32 to vector<8x256xf32>
    %137 = arith.addf %136, %135 : vector<8x256xf32>
    %138 = arith.divf %136, %137 : vector<8x256xf32>
    %139 = vector.extract_strided_slice %138 {offsets = [0, 0], sizes = [8, 128], strides = [1, 1]} : vector<8x256xf32> to vector<8x128xf32>
    %140 = vector.extract_strided_slice %138 {offsets = [0, 128], sizes = [8, 128], strides = [1, 1]} : vector<8x256xf32> to vector<8x128xf32>
    %141 = vector.extract_strided_slice %129 {offsets = [0, 256], sizes = [8, 128], strides = [1, 1]} : vector<8x384xf32> to vector<8x128xf32>
    %142 = vector.extract_strided_slice %130 {offsets = [0, 256], sizes = [8, 128], strides = [1, 1]} : vector<8x384xf32> to vector<8x128xf32>
    %143 = arith.addf %142, %12 : vector<8x128xf32>
    %144 = arith.mulf %139, %143 : vector<8x128xf32>
    %145 = arith.addf %141, %144 : vector<8x128xf32>
    %146 = math.tanh %145 : vector<8x128xf32>
    %147 = vector.extract_strided_slice %140 {offsets = [0, 0], sizes = [8, 32], strides = [1, 1]} : vector<8x128xf32> to vector<8x32xf32>
    %cst_32 = arith.constant 1.000000e+00 : f32
    %148 = vector.broadcast %cst_32 : f32 to vector<8x32xf32>
    %149 = arith.subf %148, %147 : vector<8x32xf32>
    %150 = vector.extract_strided_slice %146 {offsets = [0, 0], sizes = [8, 32], strides = [1, 1]} : vector<8x128xf32> to vector<8x32xf32>
    %151 = arith.mulf %149, %150 : vector<8x32xf32>
    %152 = vector.extract_strided_slice %140 {offsets = [0, 0], sizes = [8, 32], strides = [1, 1]} : vector<8x128xf32> to vector<8x32xf32>
    %153 = arith.mulf %152, %101 : vector<8x32xf32>
    %154 = arith.addf %151, %153 : vector<8x32xf32>
    %cst_33 = arith.constant dense<0.000000e+00> : vector<8x384xf32>
    %155 = tpu.matmul %154, %7, %cst_33 {dimension_numbers = #tpu.dot_dimension_numbers<[1], [0], [0], [1], [0, 0, 1, 1], [], []>} : vector<8x32xf32>, vector<32x384xf32>, vector<8x384xf32> -> vector<8x384xf32>
    %156 = vector.extract_strided_slice %155 {offsets = [0, 0], sizes = [8, 256], strides = [1, 1]} : vector<8x384xf32> to vector<8x256xf32>
    %157 = vector.extract_strided_slice %128 {offsets = [0, 0], sizes = [8, 256], strides = [1, 1]} : vector<8x384xf32> to vector<8x256xf32>
    %158 = arith.addf %156, %157 : vector<8x256xf32>
    %159 = arith.negf %158 : vector<8x256xf32>
    %160 = math.exp %159 : vector<8x256xf32>
    %cst_34 = arith.constant 1.000000e+00 : f32
    %161 = vector.broadcast %cst_34 : f32 to vector<8x256xf32>
    %162 = arith.addf %161, %160 : vector<8x256xf32>
    %163 = arith.divf %161, %162 : vector<8x256xf32>
    %164 = vector.extract_strided_slice %163 {offsets = [0, 0], sizes = [8, 128], strides = [1, 1]} : vector<8x256xf32> to vector<8x128xf32>
    %165 = vector.extract_strided_slice %163 {offsets = [0, 128], sizes = [8, 128], strides = [1, 1]} : vector<8x256xf32> to vector<8x128xf32>
    %166 = vector.extract_strided_slice %155 {offsets = [0, 256], sizes = [8, 128], strides = [1, 1]} : vector<8x384xf32> to vector<8x128xf32>
    %167 = arith.addf %166, %18 : vector<8x128xf32>
    %168 = vector.extract_strided_slice %128 {offsets = [0, 256], sizes = [8, 128], strides = [1, 1]} : vector<8x384xf32> to vector<8x128xf32>
    %169 = arith.mulf %164, %168 : vector<8x128xf32>
    %170 = arith.addf %167, %169 : vector<8x128xf32>
    %171 = math.tanh %170 : vector<8x128xf32>
    %172 = vector.extract_strided_slice %165 {offsets = [0, 0], sizes = [8, 32], strides = [1, 1]} : vector<8x128xf32> to vector<8x32xf32>
    %cst_35 = arith.constant 1.000000e+00 : f32
    %173 = vector.broadcast %cst_35 : f32 to vector<8x32xf32>
    %174 = arith.subf %173, %172 : vector<8x32xf32>
    %175 = vector.extract_strided_slice %171 {offsets = [0, 0], sizes = [8, 32], strides = [1, 1]} : vector<8x128xf32> to vector<8x32xf32>
    %176 = arith.mulf %174, %175 : vector<8x32xf32>
    %177 = vector.extract_strided_slice %165 {offsets = [0, 0], sizes = [8, 32], strides = [1, 1]} : vector<8x128xf32> to vector<8x32xf32>
    %178 = arith.mulf %177, %126 : vector<8x32xf32>
    %179 = arith.addf %176, %178 : vector<8x32xf32>
    %cst_36 = arith.constant dense<0.000000e+00> : vector<8x384xf32>
    %180 = tpu.matmul %179, %8, %cst_36 {dimension_numbers = #tpu.dot_dimension_numbers<[1], [0], [0], [1], [0, 0, 1, 1], [], []>} : vector<8x32xf32>, vector<32x384xf32>, vector<8x384xf32> -> vector<8x384xf32>
    %181 = arith.addf %180, %15 : vector<8x384xf32>
    %182 = vector.extract_strided_slice %5 {offsets = [24, 0], sizes = [8, 384], strides = [1, 1]} : vector<64x384xf32> to vector<8x384xf32>
    %cst_37 = arith.constant dense<0.000000e+00> : vector<8x384xf32>
    %183 = tpu.matmul %154, %6, %cst_37 {dimension_numbers = #tpu.dot_dimension_numbers<[1], [0], [0], [1], [0, 0, 1, 1], [], []>} : vector<8x32xf32>, vector<32x384xf32>, vector<8x384xf32> -> vector<8x384xf32>
    %184 = vector.extract_strided_slice %182 {offsets = [0, 0], sizes = [8, 256], strides = [1, 1]} : vector<8x384xf32> to vector<8x256xf32>
    %185 = vector.extract_strided_slice %183 {offsets = [0, 0], sizes = [8, 256], strides = [1, 1]} : vector<8x384xf32> to vector<8x256xf32>
    %186 = arith.addf %184, %185 : vector<8x256xf32>
    %187 = arith.negf %186 : vector<8x256xf32>
    %188 = math.exp %187 : vector<8x256xf32>
    %cst_38 = arith.constant 1.000000e+00 : f32
    %189 = vector.broadcast %cst_38 : f32 to vector<8x256xf32>
    %190 = arith.addf %189, %188 : vector<8x256xf32>
    %191 = arith.divf %189, %190 : vector<8x256xf32>
    %192 = vector.extract_strided_slice %191 {offsets = [0, 0], sizes = [8, 128], strides = [1, 1]} : vector<8x256xf32> to vector<8x128xf32>
    %193 = vector.extract_strided_slice %191 {offsets = [0, 128], sizes = [8, 128], strides = [1, 1]} : vector<8x256xf32> to vector<8x128xf32>
    %194 = vector.extract_strided_slice %182 {offsets = [0, 256], sizes = [8, 128], strides = [1, 1]} : vector<8x384xf32> to vector<8x128xf32>
    %195 = vector.extract_strided_slice %183 {offsets = [0, 256], sizes = [8, 128], strides = [1, 1]} : vector<8x384xf32> to vector<8x128xf32>
    %196 = arith.addf %195, %12 : vector<8x128xf32>
    %197 = arith.mulf %192, %196 : vector<8x128xf32>
    %198 = arith.addf %194, %197 : vector<8x128xf32>
    %199 = math.tanh %198 : vector<8x128xf32>
    %200 = vector.extract_strided_slice %193 {offsets = [0, 0], sizes = [8, 32], strides = [1, 1]} : vector<8x128xf32> to vector<8x32xf32>
    %cst_39 = arith.constant 1.000000e+00 : f32
    %201 = vector.broadcast %cst_39 : f32 to vector<8x32xf32>
    %202 = arith.subf %201, %200 : vector<8x32xf32>
    %203 = vector.extract_strided_slice %199 {offsets = [0, 0], sizes = [8, 32], strides = [1, 1]} : vector<8x128xf32> to vector<8x32xf32>
    %204 = arith.mulf %202, %203 : vector<8x32xf32>
    %205 = vector.extract_strided_slice %193 {offsets = [0, 0], sizes = [8, 32], strides = [1, 1]} : vector<8x128xf32> to vector<8x32xf32>
    %206 = arith.mulf %205, %154 : vector<8x32xf32>
    %207 = arith.addf %204, %206 : vector<8x32xf32>
    %cst_40 = arith.constant dense<0.000000e+00> : vector<8x384xf32>
    %208 = tpu.matmul %207, %7, %cst_40 {dimension_numbers = #tpu.dot_dimension_numbers<[1], [0], [0], [1], [0, 0, 1, 1], [], []>} : vector<8x32xf32>, vector<32x384xf32>, vector<8x384xf32> -> vector<8x384xf32>
    %209 = vector.extract_strided_slice %208 {offsets = [0, 0], sizes = [8, 256], strides = [1, 1]} : vector<8x384xf32> to vector<8x256xf32>
    %210 = vector.extract_strided_slice %181 {offsets = [0, 0], sizes = [8, 256], strides = [1, 1]} : vector<8x384xf32> to vector<8x256xf32>
    %211 = arith.addf %209, %210 : vector<8x256xf32>
    %212 = arith.negf %211 : vector<8x256xf32>
    %213 = math.exp %212 : vector<8x256xf32>
    %cst_41 = arith.constant 1.000000e+00 : f32
    %214 = vector.broadcast %cst_41 : f32 to vector<8x256xf32>
    %215 = arith.addf %214, %213 : vector<8x256xf32>
    %216 = arith.divf %214, %215 : vector<8x256xf32>
    %217 = vector.extract_strided_slice %216 {offsets = [0, 0], sizes = [8, 128], strides = [1, 1]} : vector<8x256xf32> to vector<8x128xf32>
    %218 = vector.extract_strided_slice %216 {offsets = [0, 128], sizes = [8, 128], strides = [1, 1]} : vector<8x256xf32> to vector<8x128xf32>
    %219 = vector.extract_strided_slice %208 {offsets = [0, 256], sizes = [8, 128], strides = [1, 1]} : vector<8x384xf32> to vector<8x128xf32>
    %220 = arith.addf %219, %18 : vector<8x128xf32>
    %221 = vector.extract_strided_slice %181 {offsets = [0, 256], sizes = [8, 128], strides = [1, 1]} : vector<8x384xf32> to vector<8x128xf32>
    %222 = arith.mulf %217, %221 : vector<8x128xf32>
    %223 = arith.addf %220, %222 : vector<8x128xf32>
    %224 = math.tanh %223 : vector<8x128xf32>
    %225 = vector.extract_strided_slice %218 {offsets = [0, 0], sizes = [8, 32], strides = [1, 1]} : vector<8x128xf32> to vector<8x32xf32>
    %cst_42 = arith.constant 1.000000e+00 : f32
    %226 = vector.broadcast %cst_42 : f32 to vector<8x32xf32>
    %227 = arith.subf %226, %225 : vector<8x32xf32>
    %228 = vector.extract_strided_slice %224 {offsets = [0, 0], sizes = [8, 32], strides = [1, 1]} : vector<8x128xf32> to vector<8x32xf32>
    %229 = arith.mulf %227, %228 : vector<8x32xf32>
    %230 = vector.extract_strided_slice %218 {offsets = [0, 0], sizes = [8, 32], strides = [1, 1]} : vector<8x128xf32> to vector<8x32xf32>
    %231 = arith.mulf %230, %179 : vector<8x32xf32>
    %232 = arith.addf %229, %231 : vector<8x32xf32>
    %cst_43 = arith.constant dense<0.000000e+00> : vector<8x384xf32>
    %233 = tpu.matmul %232, %8, %cst_43 {dimension_numbers = #tpu.dot_dimension_numbers<[1], [0], [0], [1], [0, 0, 1, 1], [], []>} : vector<8x32xf32>, vector<32x384xf32>, vector<8x384xf32> -> vector<8x384xf32>
    %234 = arith.addf %233, %15 : vector<8x384xf32>
    %235 = vector.extract_strided_slice %5 {offsets = [32, 0], sizes = [8, 384], strides = [1, 1]} : vector<64x384xf32> to vector<8x384xf32>
    %cst_44 = arith.constant dense<0.000000e+00> : vector<8x384xf32>
    %236 = tpu.matmul %207, %6, %cst_44 {dimension_numbers = #tpu.dot_dimension_numbers<[1], [0], [0], [1], [0, 0, 1, 1], [], []>} : vector<8x32xf32>, vector<32x384xf32>, vector<8x384xf32> -> vector<8x384xf32>
    %237 = vector.extract_strided_slice %235 {offsets = [0, 0], sizes = [8, 256], strides = [1, 1]} : vector<8x384xf32> to vector<8x256xf32>
    %238 = vector.extract_strided_slice %236 {offsets = [0, 0], sizes = [8, 256], strides = [1, 1]} : vector<8x384xf32> to vector<8x256xf32>
    %239 = arith.addf %237, %238 : vector<8x256xf32>
    %240 = arith.negf %239 : vector<8x256xf32>
    %241 = math.exp %240 : vector<8x256xf32>
    %cst_45 = arith.constant 1.000000e+00 : f32
    %242 = vector.broadcast %cst_45 : f32 to vector<8x256xf32>
    %243 = arith.addf %242, %241 : vector<8x256xf32>
    %244 = arith.divf %242, %243 : vector<8x256xf32>
    %245 = vector.extract_strided_slice %244 {offsets = [0, 0], sizes = [8, 128], strides = [1, 1]} : vector<8x256xf32> to vector<8x128xf32>
    %246 = vector.extract_strided_slice %244 {offsets = [0, 128], sizes = [8, 128], strides = [1, 1]} : vector<8x256xf32> to vector<8x128xf32>
    %247 = vector.extract_strided_slice %235 {offsets = [0, 256], sizes = [8, 128], strides = [1, 1]} : vector<8x384xf32> to vector<8x128xf32>
    %248 = vector.extract_strided_slice %236 {offsets = [0, 256], sizes = [8, 128], strides = [1, 1]} : vector<8x384xf32> to vector<8x128xf32>
    %249 = arith.addf %248, %12 : vector<8x128xf32>
    %250 = arith.mulf %245, %249 : vector<8x128xf32>
    %251 = arith.addf %247, %250 : vector<8x128xf32>
    %252 = math.tanh %251 : vector<8x128xf32>
    %253 = vector.extract_strided_slice %246 {offsets = [0, 0], sizes = [8, 32], strides = [1, 1]} : vector<8x128xf32> to vector<8x32xf32>
    %cst_46 = arith.constant 1.000000e+00 : f32
    %254 = vector.broadcast %cst_46 : f32 to vector<8x32xf32>
    %255 = arith.subf %254, %253 : vector<8x32xf32>
    %256 = vector.extract_strided_slice %252 {offsets = [0, 0], sizes = [8, 32], strides = [1, 1]} : vector<8x128xf32> to vector<8x32xf32>
    %257 = arith.mulf %255, %256 : vector<8x32xf32>
    %258 = vector.extract_strided_slice %246 {offsets = [0, 0], sizes = [8, 32], strides = [1, 1]} : vector<8x128xf32> to vector<8x32xf32>
    %259 = arith.mulf %258, %207 : vector<8x32xf32>
    %260 = arith.addf %257, %259 : vector<8x32xf32>
    %cst_47 = arith.constant dense<0.000000e+00> : vector<8x384xf32>
    %261 = tpu.matmul %260, %7, %cst_47 {dimension_numbers = #tpu.dot_dimension_numbers<[1], [0], [0], [1], [0, 0, 1, 1], [], []>} : vector<8x32xf32>, vector<32x384xf32>, vector<8x384xf32> -> vector<8x384xf32>
    %262 = vector.extract_strided_slice %261 {offsets = [0, 0], sizes = [8, 256], strides = [1, 1]} : vector<8x384xf32> to vector<8x256xf32>
    %263 = vector.extract_strided_slice %234 {offsets = [0, 0], sizes = [8, 256], strides = [1, 1]} : vector<8x384xf32> to vector<8x256xf32>
    %264 = arith.addf %262, %263 : vector<8x256xf32>
    %265 = arith.negf %264 : vector<8x256xf32>
    %266 = math.exp %265 : vector<8x256xf32>
    %cst_48 = arith.constant 1.000000e+00 : f32
    %267 = vector.broadcast %cst_48 : f32 to vector<8x256xf32>
    %268 = arith.addf %267, %266 : vector<8x256xf32>
    %269 = arith.divf %267, %268 : vector<8x256xf32>
    %270 = vector.extract_strided_slice %269 {offsets = [0, 0], sizes = [8, 128], strides = [1, 1]} : vector<8x256xf32> to vector<8x128xf32>
    %271 = vector.extract_strided_slice %269 {offsets = [0, 128], sizes = [8, 128], strides = [1, 1]} : vector<8x256xf32> to vector<8x128xf32>
    %272 = vector.extract_strided_slice %261 {offsets = [0, 256], sizes = [8, 128], strides = [1, 1]} : vector<8x384xf32> to vector<8x128xf32>
    %273 = arith.addf %272, %18 : vector<8x128xf32>
    %274 = vector.extract_strided_slice %234 {offsets = [0, 256], sizes = [8, 128], strides = [1, 1]} : vector<8x384xf32> to vector<8x128xf32>
    %275 = arith.mulf %270, %274 : vector<8x128xf32>
    %276 = arith.addf %273, %275 : vector<8x128xf32>
    %277 = math.tanh %276 : vector<8x128xf32>
    %278 = vector.extract_strided_slice %271 {offsets = [0, 0], sizes = [8, 32], strides = [1, 1]} : vector<8x128xf32> to vector<8x32xf32>
    %cst_49 = arith.constant 1.000000e+00 : f32
    %279 = vector.broadcast %cst_49 : f32 to vector<8x32xf32>
    %280 = arith.subf %279, %278 : vector<8x32xf32>
    %281 = vector.extract_strided_slice %277 {offsets = [0, 0], sizes = [8, 32], strides = [1, 1]} : vector<8x128xf32> to vector<8x32xf32>
    %282 = arith.mulf %280, %281 : vector<8x32xf32>
    %283 = vector.extract_strided_slice %271 {offsets = [0, 0], sizes = [8, 32], strides = [1, 1]} : vector<8x128xf32> to vector<8x32xf32>
    %284 = arith.mulf %283, %232 : vector<8x32xf32>
    %285 = arith.addf %282, %284 : vector<8x32xf32>
    %cst_50 = arith.constant dense<0.000000e+00> : vector<8x384xf32>
    %286 = tpu.matmul %285, %8, %cst_50 {dimension_numbers = #tpu.dot_dimension_numbers<[1], [0], [0], [1], [0, 0, 1, 1], [], []>} : vector<8x32xf32>, vector<32x384xf32>, vector<8x384xf32> -> vector<8x384xf32>
    %287 = arith.addf %286, %15 : vector<8x384xf32>
    %288 = vector.extract_strided_slice %5 {offsets = [40, 0], sizes = [8, 384], strides = [1, 1]} : vector<64x384xf32> to vector<8x384xf32>
    %cst_51 = arith.constant dense<0.000000e+00> : vector<8x384xf32>
    %289 = tpu.matmul %260, %6, %cst_51 {dimension_numbers = #tpu.dot_dimension_numbers<[1], [0], [0], [1], [0, 0, 1, 1], [], []>} : vector<8x32xf32>, vector<32x384xf32>, vector<8x384xf32> -> vector<8x384xf32>
    %290 = vector.extract_strided_slice %288 {offsets = [0, 0], sizes = [8, 256], strides = [1, 1]} : vector<8x384xf32> to vector<8x256xf32>
    %291 = vector.extract_strided_slice %289 {offsets = [0, 0], sizes = [8, 256], strides = [1, 1]} : vector<8x384xf32> to vector<8x256xf32>
    %292 = arith.addf %290, %291 : vector<8x256xf32>
    %293 = arith.negf %292 : vector<8x256xf32>
    %294 = math.exp %293 : vector<8x256xf32>
    %cst_52 = arith.constant 1.000000e+00 : f32
    %295 = vector.broadcast %cst_52 : f32 to vector<8x256xf32>
    %296 = arith.addf %295, %294 : vector<8x256xf32>
    %297 = arith.divf %295, %296 : vector<8x256xf32>
    %298 = vector.extract_strided_slice %297 {offsets = [0, 0], sizes = [8, 128], strides = [1, 1]} : vector<8x256xf32> to vector<8x128xf32>
    %299 = vector.extract_strided_slice %297 {offsets = [0, 128], sizes = [8, 128], strides = [1, 1]} : vector<8x256xf32> to vector<8x128xf32>
    %300 = vector.extract_strided_slice %288 {offsets = [0, 256], sizes = [8, 128], strides = [1, 1]} : vector<8x384xf32> to vector<8x128xf32>
    %301 = vector.extract_strided_slice %289 {offsets = [0, 256], sizes = [8, 128], strides = [1, 1]} : vector<8x384xf32> to vector<8x128xf32>
    %302 = arith.addf %301, %12 : vector<8x128xf32>
    %303 = arith.mulf %298, %302 : vector<8x128xf32>
    %304 = arith.addf %300, %303 : vector<8x128xf32>
    %305 = math.tanh %304 : vector<8x128xf32>
    %306 = vector.extract_strided_slice %299 {offsets = [0, 0], sizes = [8, 32], strides = [1, 1]} : vector<8x128xf32> to vector<8x32xf32>
    %cst_53 = arith.constant 1.000000e+00 : f32
    %307 = vector.broadcast %cst_53 : f32 to vector<8x32xf32>
    %308 = arith.subf %307, %306 : vector<8x32xf32>
    %309 = vector.extract_strided_slice %305 {offsets = [0, 0], sizes = [8, 32], strides = [1, 1]} : vector<8x128xf32> to vector<8x32xf32>
    %310 = arith.mulf %308, %309 : vector<8x32xf32>
    %311 = vector.extract_strided_slice %299 {offsets = [0, 0], sizes = [8, 32], strides = [1, 1]} : vector<8x128xf32> to vector<8x32xf32>
    %312 = arith.mulf %311, %260 : vector<8x32xf32>
    %313 = arith.addf %310, %312 : vector<8x32xf32>
    %cst_54 = arith.constant dense<0.000000e+00> : vector<8x384xf32>
    %314 = tpu.matmul %313, %7, %cst_54 {dimension_numbers = #tpu.dot_dimension_numbers<[1], [0], [0], [1], [0, 0, 1, 1], [], []>} : vector<8x32xf32>, vector<32x384xf32>, vector<8x384xf32> -> vector<8x384xf32>
    %315 = vector.extract_strided_slice %314 {offsets = [0, 0], sizes = [8, 256], strides = [1, 1]} : vector<8x384xf32> to vector<8x256xf32>
    %316 = vector.extract_strided_slice %287 {offsets = [0, 0], sizes = [8, 256], strides = [1, 1]} : vector<8x384xf32> to vector<8x256xf32>
    %317 = arith.addf %315, %316 : vector<8x256xf32>
    %318 = arith.negf %317 : vector<8x256xf32>
    %319 = math.exp %318 : vector<8x256xf32>
    %cst_55 = arith.constant 1.000000e+00 : f32
    %320 = vector.broadcast %cst_55 : f32 to vector<8x256xf32>
    %321 = arith.addf %320, %319 : vector<8x256xf32>
    %322 = arith.divf %320, %321 : vector<8x256xf32>
    %323 = vector.extract_strided_slice %322 {offsets = [0, 0], sizes = [8, 128], strides = [1, 1]} : vector<8x256xf32> to vector<8x128xf32>
    %324 = vector.extract_strided_slice %322 {offsets = [0, 128], sizes = [8, 128], strides = [1, 1]} : vector<8x256xf32> to vector<8x128xf32>
    %325 = vector.extract_strided_slice %314 {offsets = [0, 256], sizes = [8, 128], strides = [1, 1]} : vector<8x384xf32> to vector<8x128xf32>
    %326 = arith.addf %325, %18 : vector<8x128xf32>
    %327 = vector.extract_strided_slice %287 {offsets = [0, 256], sizes = [8, 128], strides = [1, 1]} : vector<8x384xf32> to vector<8x128xf32>
    %328 = arith.mulf %323, %327 : vector<8x128xf32>
    %329 = arith.addf %326, %328 : vector<8x128xf32>
    %330 = math.tanh %329 : vector<8x128xf32>
    %331 = vector.extract_strided_slice %324 {offsets = [0, 0], sizes = [8, 32], strides = [1, 1]} : vector<8x128xf32> to vector<8x32xf32>
    %cst_56 = arith.constant 1.000000e+00 : f32
    %332 = vector.broadcast %cst_56 : f32 to vector<8x32xf32>
    %333 = arith.subf %332, %331 : vector<8x32xf32>
    %334 = vector.extract_strided_slice %330 {offsets = [0, 0], sizes = [8, 32], strides = [1, 1]} : vector<8x128xf32> to vector<8x32xf32>
    %335 = arith.mulf %333, %334 : vector<8x32xf32>
    %336 = vector.extract_strided_slice %324 {offsets = [0, 0], sizes = [8, 32], strides = [1, 1]} : vector<8x128xf32> to vector<8x32xf32>
    %337 = arith.mulf %336, %285 : vector<8x32xf32>
    %338 = arith.addf %335, %337 : vector<8x32xf32>
    %cst_57 = arith.constant dense<0.000000e+00> : vector<8x384xf32>
    %339 = tpu.matmul %338, %8, %cst_57 {dimension_numbers = #tpu.dot_dimension_numbers<[1], [0], [0], [1], [0, 0, 1, 1], [], []>} : vector<8x32xf32>, vector<32x384xf32>, vector<8x384xf32> -> vector<8x384xf32>
    %340 = arith.addf %339, %15 : vector<8x384xf32>
    %341 = vector.extract_strided_slice %5 {offsets = [48, 0], sizes = [8, 384], strides = [1, 1]} : vector<64x384xf32> to vector<8x384xf32>
    %cst_58 = arith.constant dense<0.000000e+00> : vector<8x384xf32>
    %342 = tpu.matmul %313, %6, %cst_58 {dimension_numbers = #tpu.dot_dimension_numbers<[1], [0], [0], [1], [0, 0, 1, 1], [], []>} : vector<8x32xf32>, vector<32x384xf32>, vector<8x384xf32> -> vector<8x384xf32>
    %343 = vector.extract_strided_slice %341 {offsets = [0, 0], sizes = [8, 256], strides = [1, 1]} : vector<8x384xf32> to vector<8x256xf32>
    %344 = vector.extract_strided_slice %342 {offsets = [0, 0], sizes = [8, 256], strides = [1, 1]} : vector<8x384xf32> to vector<8x256xf32>
    %345 = arith.addf %343, %344 : vector<8x256xf32>
    %346 = arith.negf %345 : vector<8x256xf32>
    %347 = math.exp %346 : vector<8x256xf32>
    %cst_59 = arith.constant 1.000000e+00 : f32
    %348 = vector.broadcast %cst_59 : f32 to vector<8x256xf32>
    %349 = arith.addf %348, %347 : vector<8x256xf32>
    %350 = arith.divf %348, %349 : vector<8x256xf32>
    %351 = vector.extract_strided_slice %350 {offsets = [0, 0], sizes = [8, 128], strides = [1, 1]} : vector<8x256xf32> to vector<8x128xf32>
    %352 = vector.extract_strided_slice %350 {offsets = [0, 128], sizes = [8, 128], strides = [1, 1]} : vector<8x256xf32> to vector<8x128xf32>
    %353 = vector.extract_strided_slice %341 {offsets = [0, 256], sizes = [8, 128], strides = [1, 1]} : vector<8x384xf32> to vector<8x128xf32>
    %354 = vector.extract_strided_slice %342 {offsets = [0, 256], sizes = [8, 128], strides = [1, 1]} : vector<8x384xf32> to vector<8x128xf32>
    %355 = arith.addf %354, %12 : vector<8x128xf32>
    %356 = arith.mulf %351, %355 : vector<8x128xf32>
    %357 = arith.addf %353, %356 : vector<8x128xf32>
    %358 = math.tanh %357 : vector<8x128xf32>
    %359 = vector.extract_strided_slice %352 {offsets = [0, 0], sizes = [8, 32], strides = [1, 1]} : vector<8x128xf32> to vector<8x32xf32>
    %cst_60 = arith.constant 1.000000e+00 : f32
    %360 = vector.broadcast %cst_60 : f32 to vector<8x32xf32>
    %361 = arith.subf %360, %359 : vector<8x32xf32>
    %362 = vector.extract_strided_slice %358 {offsets = [0, 0], sizes = [8, 32], strides = [1, 1]} : vector<8x128xf32> to vector<8x32xf32>
    %363 = arith.mulf %361, %362 : vector<8x32xf32>
    %364 = vector.extract_strided_slice %352 {offsets = [0, 0], sizes = [8, 32], strides = [1, 1]} : vector<8x128xf32> to vector<8x32xf32>
    %365 = arith.mulf %364, %313 : vector<8x32xf32>
    %366 = arith.addf %363, %365 : vector<8x32xf32>
    %cst_61 = arith.constant dense<0.000000e+00> : vector<8x384xf32>
    %367 = tpu.matmul %366, %7, %cst_61 {dimension_numbers = #tpu.dot_dimension_numbers<[1], [0], [0], [1], [0, 0, 1, 1], [], []>} : vector<8x32xf32>, vector<32x384xf32>, vector<8x384xf32> -> vector<8x384xf32>
    %368 = vector.extract_strided_slice %367 {offsets = [0, 0], sizes = [8, 256], strides = [1, 1]} : vector<8x384xf32> to vector<8x256xf32>
    %369 = vector.extract_strided_slice %340 {offsets = [0, 0], sizes = [8, 256], strides = [1, 1]} : vector<8x384xf32> to vector<8x256xf32>
    %370 = arith.addf %368, %369 : vector<8x256xf32>
    %371 = arith.negf %370 : vector<8x256xf32>
    %372 = math.exp %371 : vector<8x256xf32>
    %cst_62 = arith.constant 1.000000e+00 : f32
    %373 = vector.broadcast %cst_62 : f32 to vector<8x256xf32>
    %374 = arith.addf %373, %372 : vector<8x256xf32>
    %375 = arith.divf %373, %374 : vector<8x256xf32>
    %376 = vector.extract_strided_slice %375 {offsets = [0, 0], sizes = [8, 128], strides = [1, 1]} : vector<8x256xf32> to vector<8x128xf32>
    %377 = vector.extract_strided_slice %375 {offsets = [0, 128], sizes = [8, 128], strides = [1, 1]} : vector<8x256xf32> to vector<8x128xf32>
    %378 = vector.extract_strided_slice %367 {offsets = [0, 256], sizes = [8, 128], strides = [1, 1]} : vector<8x384xf32> to vector<8x128xf32>
    %379 = arith.addf %378, %18 : vector<8x128xf32>
    %380 = vector.extract_strided_slice %340 {offsets = [0, 256], sizes = [8, 128], strides = [1, 1]} : vector<8x384xf32> to vector<8x128xf32>
    %381 = arith.mulf %376, %380 : vector<8x128xf32>
    %382 = arith.addf %379, %381 : vector<8x128xf32>
    %383 = math.tanh %382 : vector<8x128xf32>
    %384 = vector.extract_strided_slice %377 {offsets = [0, 0], sizes = [8, 32], strides = [1, 1]} : vector<8x128xf32> to vector<8x32xf32>
    %cst_63 = arith.constant 1.000000e+00 : f32
    %385 = vector.broadcast %cst_63 : f32 to vector<8x32xf32>
    %386 = arith.subf %385, %384 : vector<8x32xf32>
    %387 = vector.extract_strided_slice %383 {offsets = [0, 0], sizes = [8, 32], strides = [1, 1]} : vector<8x128xf32> to vector<8x32xf32>
    %388 = arith.mulf %386, %387 : vector<8x32xf32>
    %389 = vector.extract_strided_slice %377 {offsets = [0, 0], sizes = [8, 32], strides = [1, 1]} : vector<8x128xf32> to vector<8x32xf32>
    %390 = arith.mulf %389, %338 : vector<8x32xf32>
    %391 = arith.addf %388, %390 : vector<8x32xf32>
    %cst_64 = arith.constant dense<0.000000e+00> : vector<8x384xf32>
    %392 = tpu.matmul %391, %8, %cst_64 {dimension_numbers = #tpu.dot_dimension_numbers<[1], [0], [0], [1], [0, 0, 1, 1], [], []>} : vector<8x32xf32>, vector<32x384xf32>, vector<8x384xf32> -> vector<8x384xf32>
    %393 = arith.addf %392, %15 : vector<8x384xf32>
    %394 = vector.extract_strided_slice %5 {offsets = [56, 0], sizes = [8, 384], strides = [1, 1]} : vector<64x384xf32> to vector<8x384xf32>
    %cst_65 = arith.constant dense<0.000000e+00> : vector<8x384xf32>
    %395 = tpu.matmul %366, %6, %cst_65 {dimension_numbers = #tpu.dot_dimension_numbers<[1], [0], [0], [1], [0, 0, 1, 1], [], []>} : vector<8x32xf32>, vector<32x384xf32>, vector<8x384xf32> -> vector<8x384xf32>
    %396 = vector.extract_strided_slice %394 {offsets = [0, 0], sizes = [8, 256], strides = [1, 1]} : vector<8x384xf32> to vector<8x256xf32>
    %397 = vector.extract_strided_slice %395 {offsets = [0, 0], sizes = [8, 256], strides = [1, 1]} : vector<8x384xf32> to vector<8x256xf32>
    %398 = arith.addf %396, %397 : vector<8x256xf32>
    %399 = arith.negf %398 : vector<8x256xf32>
    %400 = math.exp %399 : vector<8x256xf32>
    %cst_66 = arith.constant 1.000000e+00 : f32
    %401 = vector.broadcast %cst_66 : f32 to vector<8x256xf32>
    %402 = arith.addf %401, %400 : vector<8x256xf32>
    %403 = arith.divf %401, %402 : vector<8x256xf32>
    %404 = vector.extract_strided_slice %403 {offsets = [0, 0], sizes = [8, 128], strides = [1, 1]} : vector<8x256xf32> to vector<8x128xf32>
    %405 = vector.extract_strided_slice %403 {offsets = [0, 128], sizes = [8, 128], strides = [1, 1]} : vector<8x256xf32> to vector<8x128xf32>
    %406 = vector.extract_strided_slice %394 {offsets = [0, 256], sizes = [8, 128], strides = [1, 1]} : vector<8x384xf32> to vector<8x128xf32>
    %407 = vector.extract_strided_slice %395 {offsets = [0, 256], sizes = [8, 128], strides = [1, 1]} : vector<8x384xf32> to vector<8x128xf32>
    %408 = arith.addf %407, %12 : vector<8x128xf32>
    %409 = arith.mulf %404, %408 : vector<8x128xf32>
    %410 = arith.addf %406, %409 : vector<8x128xf32>
    %411 = math.tanh %410 : vector<8x128xf32>
    %412 = vector.extract_strided_slice %405 {offsets = [0, 0], sizes = [8, 32], strides = [1, 1]} : vector<8x128xf32> to vector<8x32xf32>
    %cst_67 = arith.constant 1.000000e+00 : f32
    %413 = vector.broadcast %cst_67 : f32 to vector<8x32xf32>
    %414 = arith.subf %413, %412 : vector<8x32xf32>
    %415 = vector.extract_strided_slice %411 {offsets = [0, 0], sizes = [8, 32], strides = [1, 1]} : vector<8x128xf32> to vector<8x32xf32>
    %416 = arith.mulf %414, %415 : vector<8x32xf32>
    %417 = vector.extract_strided_slice %405 {offsets = [0, 0], sizes = [8, 32], strides = [1, 1]} : vector<8x128xf32> to vector<8x32xf32>
    %418 = arith.mulf %417, %366 : vector<8x32xf32>
    %419 = arith.addf %416, %418 : vector<8x32xf32>
    %cst_68 = arith.constant dense<0.000000e+00> : vector<8x384xf32>
    %420 = tpu.matmul %419, %7, %cst_68 {dimension_numbers = #tpu.dot_dimension_numbers<[1], [0], [0], [1], [0, 0, 1, 1], [], []>} : vector<8x32xf32>, vector<32x384xf32>, vector<8x384xf32> -> vector<8x384xf32>
    %421 = vector.extract_strided_slice %420 {offsets = [0, 0], sizes = [8, 256], strides = [1, 1]} : vector<8x384xf32> to vector<8x256xf32>
    %422 = vector.extract_strided_slice %393 {offsets = [0, 0], sizes = [8, 256], strides = [1, 1]} : vector<8x384xf32> to vector<8x256xf32>
    %423 = arith.addf %421, %422 : vector<8x256xf32>
    %424 = arith.negf %423 : vector<8x256xf32>
    %425 = math.exp %424 : vector<8x256xf32>
    %cst_69 = arith.constant 1.000000e+00 : f32
    %426 = vector.broadcast %cst_69 : f32 to vector<8x256xf32>
    %427 = arith.addf %426, %425 : vector<8x256xf32>
    %428 = arith.divf %426, %427 : vector<8x256xf32>
    %429 = vector.extract_strided_slice %428 {offsets = [0, 0], sizes = [8, 128], strides = [1, 1]} : vector<8x256xf32> to vector<8x128xf32>
    %430 = vector.extract_strided_slice %428 {offsets = [0, 128], sizes = [8, 128], strides = [1, 1]} : vector<8x256xf32> to vector<8x128xf32>
    %431 = vector.extract_strided_slice %420 {offsets = [0, 256], sizes = [8, 128], strides = [1, 1]} : vector<8x384xf32> to vector<8x128xf32>
    %432 = arith.addf %431, %18 : vector<8x128xf32>
    %433 = vector.extract_strided_slice %393 {offsets = [0, 256], sizes = [8, 128], strides = [1, 1]} : vector<8x384xf32> to vector<8x128xf32>
    %434 = arith.mulf %429, %433 : vector<8x128xf32>
    %435 = arith.addf %432, %434 : vector<8x128xf32>
    %436 = math.tanh %435 : vector<8x128xf32>
    %437 = vector.extract_strided_slice %430 {offsets = [0, 0], sizes = [8, 32], strides = [1, 1]} : vector<8x128xf32> to vector<8x32xf32>
    %cst_70 = arith.constant 1.000000e+00 : f32
    %438 = vector.broadcast %cst_70 : f32 to vector<8x32xf32>
    %439 = arith.subf %438, %437 : vector<8x32xf32>
    %440 = vector.extract_strided_slice %436 {offsets = [0, 0], sizes = [8, 32], strides = [1, 1]} : vector<8x128xf32> to vector<8x32xf32>
    %441 = arith.mulf %439, %440 : vector<8x32xf32>
    %442 = vector.extract_strided_slice %430 {offsets = [0, 0], sizes = [8, 32], strides = [1, 1]} : vector<8x128xf32> to vector<8x32xf32>
    %443 = arith.mulf %442, %391 : vector<8x32xf32>
    %444 = arith.addf %441, %443 : vector<8x32xf32>
    %cst_71 = arith.constant dense<0.000000e+00> : vector<8x128xf32>
    %445 = tpu.matmul %444, %9, %cst_71 {dimension_numbers = #tpu.dot_dimension_numbers<[1], [0], [0], [1], [0, 0, 1, 1], [], []>} : vector<8x32xf32>, vector<32x128xf32>, vector<8x128xf32> -> vector<8x128xf32>
    %c4 = arith.constant 4 : index
    %c0_72 = arith.constant 0 : index
    %446 = vector.load %arg2[%c4, %c0_72] : memref<8x384xf32, #tpu.memory_space<vmem>>, vector<1x128xf32>
    %447 = vector.broadcast %446 : vector<1x128xf32> to vector<8x128xf32>
    %448 = arith.addf %445, %447 : vector<8x128xf32>
    %c0_73 = arith.constant 0 : index
    %c0_74 = arith.constant 0 : index
    %449 = vector.load %arg4[%c0_73, %c0_74] : memref<8x128xf32, #tpu.memory_space<vmem>>, vector<8x128xf32>
    tpu.vector_store %arg4[%c0_73, %c0_74], %448 {strides = array<i32>} : memref<8x128xf32, #tpu.memory_space<vmem>>, vector<8x128xf32>,
    return
  }
}

</mosaic_0001>

<bundles_post_ra>
// kernel: tpu_custom_call.1
= control target key start
LH: loop header
LB: loop body
LE: loop exit
PB: predicated region body
PF: predicated region fallthrough
CT: control target
= control target key end

     0   :  { %9 = vsyncpa [#allocation3], 0  ;;  %s6061_s0 = inlined_call_operand.vmem [shape: f32[64,8], index: 0, kind: input, shape index: {}]   ;;  %s6062_s1 = inlined_call_operand.vmem [shape: f32[8,384], index: 1, kind: input, shape index: {}]   ;;  %s6063_s2 = inlined_call_operand.vmem [shape: f32[8,384], index: 2, kind: input, shape index: {}]   ;;  %s6064_s3 = inlined_call_operand.hbm [shape: f32[128,384], index: 3, kind: input, shape index: {}]   ;;  %s6065_s4 = inlined_call_operand.hbm [shape: f32[8,128], index: 4, kind: output, shape index: {}]  }
   0x1   :  { %10 = vsyncpa [#allocation4], 0  ;;  %s5380_s15 = smov [#allocation2]   ;;  %s5332_s19 = scalar_lea.hbm %s6064_s3, 6144 }
   0x2   :  { %s22_s16 = sshll.u32 %s5380_s15, 4  ;;  %p5333_p0 = scmp.ne.s32.totalorder %s6064_s3, %s5332_s19  ;;  %s23_s16 = int_to_ptr.vmem [resolvable:$true] %s22_s16 }
   0x3   :  { %p5336_p1 = scmp.lt.u32.totalorder %s5332_s19, %s6064_s3 }
   0x5   :  { %p5338_p2 = pnand %p5336_p1, %p5333_p0 }
   0x7   :  { %5341 = shalt.err (!%p5338_p2)
}
   0x8   :  { %s5342_s24 = scalar_lea.vmem %s23_s16, 6144  ;;  %p5347_p4 = scmp.lt.s32.totalorder %s23_s16, %s23_s16 }
   0x9   :  { %p5343_p3 = scmp.ne.s32.totalorder %s23_s16, %s5342_s24  ;;  %p5348_p5 = scmp.lt.s32.totalorder %s5342_s24, %s5342_s24 }
   0xb   :  { %p5349_p6 = por %p5348_p5, %p5347_p4 }
   0xd   :  { %p5350_p7 = pnand %p5349_p6, %p5343_p3 }
   0xf   :  { %5353 = shalt.err (!%p5350_p7)
}
  0x10   :  { %s5381_s25 = smov 384   ;;  %s5382_s26 = smov 24  }
  0x11   :  { %28 = dma.hbm_to_vmem [thread:$0]  %s6064_s3, 6144, %s23_s16, [#allocation3], %s5381_s25, %s5381_s25, %s5382_s26  }
  0x12   :  { %5376 = dma.done.wait [#allocation3], 6144  }
  0x13   :  { %5377 = vsyncadd [#allocation3], 4294961152  ;;  %v5383_v0 = vmov 0.0   ;;  %v41_v1 = vld [vmem:[%s6062_s1 + $0x8] sm:$0xff]  ;;  %v40_v2 = vld [vmem:[%s6062_s1] sm:$0xff]  ;;  %vm60_vm0 = vcmask 64512  }
  0x14   :  { %149 = vmatprep.mubr.f32.mxu0 %v5383_v0  ;;  %191 = vmatprep.mubr.f32.mxu1 %v5383_v0  ;;  %v32_v3 = vld [vmem:[%s6061_s0] sm:$0xff]  ;;  %v304_v4 = vld [vmem:[#allocation2 + $0x8] sm:$0xff]  ;;  %v307_v5 = vld [vmem:[#allocation2 + $0x20] sm:$0xff]  ;;  %v5384_v33 = vmov 0.0|0.0   ;;  %vm5385_vm1 = vmmov 0   ;;  %vm363_vm2 = vcmask 261120  }
  0x15   :  { %85 = vmatprep.subr.mxu0 %v41_v1  ;;  %v303_v6 = vld [vmem:[#allocation2] sm:$0xff]  ;;  %5097 = vmatprep.subr.mxu1 %v41_v1  ;;  %v5435_v7 = vpack.c.bf16 %v307_v5, %v304_v4  ;;  %v306_v8 = vld [vmem:[#allocation2 + $0x18] sm:$0xff]  ;;  %v313_v11 = vld [vmem:[#allocation2 + $0x50] sm:$0xff]  ;;  %v45_v4 = vlaneseq  ;;  %s5386_s9 = smov [#allocation5]  }
  0x16   :  { %86 = vmatpush1.msra.mxu0 %v40_v2  ;;  %5098 = vmatpush1.msra.mxu1 %v40_v2  ;;  %v5438_v9 = vpack.c.bf16 %v306_v8, %v303_v6  ;;  %v310_v10 = vld [vmem:[#allocation2 + $0x38] sm:$0xff]  ;;  %v309_v14 = vld [vmem:[#allocation2 + $0x30] sm:$0xff]  ;;  %v312_v15 = vld [vmem:[#allocation2 + $0x48] sm:$0xff]  ;;  %s4229_s10 = sshll.u32 %s5386_s9, 4  ;;  %s4230_s10 = int_to_ptr.vmem [resolvable:$true] %s4229_s10 }
  0x17   :  { %4238 = vmatmul.mubr.msk.f32.vlgmr.msra.gmra.mrb[0].mxu0 %vm60_vm0, %v32_v3  ;;  %4770 = vmatprep.subr.bf16.mxu0 %v5435_v7  ;;  %v33_v12 = vld [vmem:[%s6061_s0 + $0x8] sm:$0xff]  ;;  %v5445_v13 = vpack.c.bf16 %v313_v11, %v310_v10  ;;  %v5448_v16 = vpack.c.bf16 %v312_v15, %v309_v14  ;;  %v39_v17 = vld [vmem:[%s6061_s0 + $0x38] sm:$0xff]  ;;  %v42_v18 = vld [vmem:[%s6062_s1 + $0x10] sm:$0xff]  ;;  %v5556_v5 = vshrl.u32 %v45_v4, 7  ;;  %s5354_s11 = scalar_lea.vmem %s4230_s10, 128  ;;  %p5359_p9 = scmp.lt.s32.totalorder %s4230_s10, %s4230_s10 }
  0x18   :  { %155 = vmatprep.mubr.f32.mxu0 %v5383_v0  ;;  %4772 = vmatpush1.bf16.msra.mxu0 %v5438_v9  ;;  %v328_v19 = vld [vmem:[#allocation2 + $0xc8] sm:$0xff]  ;;  %v331_v20 = vld [vmem:[#allocation2 + $0xe0] sm:$0xff]  ;;  %v330_v23 = vld [vmem:[#allocation2 + $0xd8] sm:$0xff]  ;;  %p5355_p8 = scmp.ne.s32.totalorder %s4230_s10, %s5354_s11  ;;  %p5360_p10 = scmp.lt.s32.totalorder %s5354_s11, %s5354_s11 }
  0x19   :  { %4774 = vmatprep.subr.bf16.mxu0 %v5445_v13  ;;  %4245 = vmatmul.mubr.msk.f32.vlgmr.msra.gmra.mrb[0].mxu1 %vm60_vm0, %v39_v17  ;;  %v5459_v21 = vpack.c.bf16 %v331_v20, %v328_v19  ;;  %v327_v22 = vld [vmem:[#allocation2 + $0xc0] sm:$0xff]  ;;  %v334_v24 = vld [vmem:[#allocation2 + $0xf8] sm:$0xff]  ;;  %v337_v27 = vld [vmem:[#allocation2 + $0x110] sm:$0xff]  ;;  %v55_v6 = vsub.s32 2, %v5556_v5 }
  0x1a   :  { %4466 = vmatprep.subr.mxu1 %v42_v18  ;;  %v34_v25 = vld [vmem:[%s6061_s0 + $0x10] sm:$0xff]  ;;  %v5465_v26 = vpack.c.bf16 %v330_v23, %v327_v22  ;;  %4468 = vmatprep.mubr.msk.f32.mxu1 %vm60_vm0, %v32_v3  ;;  %v5469_v28 = vpack.c.bf16 %v337_v27, %v334_v24  ;;  %v333_v29 = vld [vmem:[#allocation2 + $0xf0] sm:$0xff]  ;;  %v336_v30 = vld [vmem:[#allocation2 + $0x108] sm:$0xff]  ;;  %p5361_p11 = por %p5360_p10, %p5359_p9 }
  0x1b   :  { %4239 = vmatmul.mubr.msk.f32.gmra.mrb[2].mxu0 %vm60_vm0, %v33_v12  ;;  %4467 = vmatpush3.msra.mxu1 %v42_v18  ;;  %v35_v31 = vld [vmem:[%s6061_s0 + $0x18] sm:$0xff]  ;;  %v5480_v32 = vpack.c.bf16 %v336_v30, %v333_v29  ;;  %v36_v34 = vld [vmem:[%s6061_s0 + $0x20] sm:$0xff]  ;;  %v37_v35 = vld [vmem:[%s6061_s0 + $0x28] sm:$0xff] }
  0x1c   :  { %161 = vmatprep.mubr.f32.mxu0 %v5383_v0  ;;  %4776 = vmatpush1.bf16.msra.mxu0 %v5448_v16  ;;  %v38_v36 = vld [vmem:[%s6061_s0 + $0x30] sm:$0xff]  ;;  %v329_v37 = vld [vmem:[#allocation2 + $0xd0] sm:$0xff]  ;;  %v332_v38 = vld [vmem:[#allocation2 + $0xe8] sm:$0xff]  ;;  %p5362_p12 = pnand %p5361_p11, %p5355_p8 }
  0x1d   :  { %4469 = vmatmul.mubr.msk.f32.vlgmr.msra.gmra.mrb[2].mxu1 %vm60_vm0, %v33_v12  ;;  %4756 = vmatprep.subr.bf16.mxu1 %v5459_v21  ;;  %v5506_v39 = vpack.c.bf16 %v332_v38, %v329_v37  ;;  %v335_v40 = vld [vmem:[#allocation2 + $0x100] sm:$0xff]  ;;  %v338_v41 = vld [vmem:[#allocation2 + $0x118] sm:$0xff]  ;;  %v305_v43 = vld [vmem:[#allocation2 + $0x10] sm:$0xff] }
  0x1e   :  { %4758 = vmatpush1.bf16.msra.mxu1 %v5465_v26  ;;  %4471 = vmatprep.mubr.msk.f32.mxu1 %vm60_vm0, %v34_v25  ;;  %v5512_v42 = vpack.c.bf16 %v338_v41, %v335_v40  ;;  %v308_v44 = vld [vmem:[#allocation2 + $0x28] sm:$0xff]  ;;  %v311_v46 = vld [vmem:[#allocation2 + $0x40] sm:$0xff]  ;;  %v314_v47 = vld [vmem:[#allocation2 + $0x58] sm:$0xff] }
  0x1f   :  { %4240 = vmatmul.mubr.msk.f32.gmra.mrb[4].mxu0 %vm60_vm0, %v34_v25  ;;  %4760 = vmatprep.subr.bf16.mxu1 %v5469_v28  ;;  %v5520_v45 = vpack.c.bf16 %v308_v44, %v305_v43  ;;  %v5527_v48 = vpack.c.bf16 %v314_v47, %v311_v46  ;;  %v316_v49 = vld [vmem:[#allocation2 + $0x68] sm:$0xff]  ;;  %v319_v50 = vld [vmem:[#allocation2 + $0x80] sm:$0xff]  ;;  %v318_v53 = vld [vmem:[#allocation2 + $0x78] sm:$0xff] }
  0x20   :  { %167 = vmatprep.mubr.f32.mxu0 %v5383_v0  ;;  %4791 = vmatprep.subr.bf16.mxu0 %v5384_v33  ;;  %v315_v51 = vld [vmem:[#allocation2 + $0x60] sm:$0xff]  ;;  %v5535_v52 = vpack.c.bf16 %v319_v50, %v316_v49  ;;  %v317_v54 = vld [vmem:[#allocation2 + $0x70] sm:$0xff]  ;;  %v320_v55 = vld [vmem:[#allocation2 + $0x88] sm:$0xff] }
  0x21   :  { %4472 = vmatmul.mubr.msk.f32.gmra.mrb[4].mxu1 %vm60_vm0, %v35_v31  ;;  %v5537_v56 = vpack.c.bf16 %v318_v53, %v315_v51  ;;  %v5539_v57 = vpack.c.bf16 %v320_v55, %v317_v54  ;;  %v322_v58 = vld [vmem:[#allocation2 + $0x98] sm:$0xff]  ;;  %v325_v59 = vld [vmem:[#allocation2 + $0xb0] sm:$0xff]  ;;  %v324_v62 = vld [vmem:[#allocation2 + $0xa8] sm:$0xff] }
  0x22   :  { %4474 = vmatprep.mubr.msk.f32.mxu1 %vm60_vm0, %v36_v34  ;;  %4762 = vmatpush1.bf16.msra.mxu1 %v5480_v32  ;;  %v321_v60 = vld [vmem:[#allocation2 + $0x90] sm:$0xff]  ;;  %v5542_v61 = vpack.c.bf16 %v325_v59, %v322_v58  ;;  %v323_v63 = vld [vmem:[#allocation2 + $0xa0] sm:$0xff]  ;;  %v326_v1 = vld [vmem:[#allocation2 + $0xb8] sm:$0xff] }
  0x23   :  { %4241 = vmatmul.mubr.msk.f32.gmra.mrb[6].mxu0 %vm60_vm0, %v35_v31  ;;  %4763 = vmatprep.subr.bf16.mxu1 %v5384_v33  ;;  %v5546_v2 = vpack.c.bf16 %v324_v62, %v321_v60  ;;  %v5548_v3 = vpack.c.bf16 %v326_v1, %v323_v63  ;;  %v43_v8 = vld [vmem:[%s6063_s2] ss:$8 sm:$0x7]  ;;  %v5593_v59 = vld [vmem:[%s6063_s2 + $0x1] ss:$0 sm:$0xff] }
  0x24   :  { %173 = vmatprep.mubr.f32.mxu0 %v5383_v0  ;;  %v56_v12 = vrot.slane %v43_v8, %v55_v6 }
  0x25   :  { %4475 = vmatmul.mubr.msk.f32.gmra.mrb[6].mxu1 %vm60_vm0, %v37_v35 }
  0x26   :  { %4477 = vmatprep.mubr.msk.f32.mxu1 %vm60_vm0, %v38_v36 }
  0x27   :  { %4242 = vmatmul.mubr.msk.f32.gmra.mrb[8].mxu0 %vm60_vm0, %v36_v34 }
  0x28   :  { %179 = vmatprep.mubr.f32.mxu0 %v5383_v0 }
  0x29   :  { %4478 = vmatmul.mubr.msk.f32.gmra.mrb[8].mxu1 %vm60_vm0, %v39_v17 }
  0x2a   :  { %431 = vmatprep.mubr.f32.mxu1 %v5383_v0 }
  0x2b   :  { %4243 = vmatmul.mubr.msk.f32.gmra.mrb[10].mxu0 %vm60_vm0, %v37_v35  ;;  %v47_v35 = vsub.s32 0, %v5556_v5 }
  0x2c   :  { %185 = vmatprep.mubr.f32.mxu0 %v5383_v0 }
  0x2d   :  { %432 = vmatmul.mubr.f32.vlgmr.msra.gmra.mrb[10].mxu1 %v5383_v0  ;;  %v5584_v37 = vrot.slane %v43_v8, %v47_v35 }
  0x2e   :  { %4765 = vmatpush3.bf16.msra.mxu1 %v5506_v39  ;;  %4488 = vmatprep.mubr.msk.f32.mxu1 %vm5385_vm1, %v5383_v0 }
  0x2f   :  { %4244 = vmatmul.mubr.msk.f32.gmra.mrb[12].mxu0 %vm60_vm0, %v38_v36  ;;  %4766 = vmatprep.subr.bf16.mxu1 %v5384_v33  ;;  %v51_v36 = vsub.s32 1, %v5556_v5 }
  0x30   :  { %572 = vmatprep.mubr.f32.mxu0 %v5383_v0 }
  0x31   :  { %v5587_v43 = vrot.slane %v43_v8, %v51_v36 }
  0x32   :  { %4768 = vmatpush3.bf16.msra.mxu1 %v5512_v42 }
  0x33   :  { %573 = vmatmul.mubr.f32.vlgmr.msra.gmra.mrb[0].mxu0 %v5383_v0  ;;  %4777 = vmatprep.subr.bf16.mxu1 %v5384_v33 }
  0x34   :  { %4510 = vmatprep.mubr.msk.f32.mxu0 %vm5385_vm1, %v5383_v0  ;;  %4793 = vmatpush3.bf16.msra.mxu0 %v5539_v57 }
  0x35   :  { %4489 = vmatmul.mubr.f32.vlgmr.msra.gmra.mrb[12].mxu1 %v5383_v0  ;;  %4794 = vmatprep.subr.bf16.mxu0 %v5384_v33 }
  0x36   :  { %4779 = vmatpush3.bf16.msra.mxu1 %v5520_v45  ;;  %4499 = vmatprep.mubr.msk.f32.mxu1 %vm5385_vm1, %v5383_v0 }
  0x37   :  { %4780 = vmatprep.subr.bf16.mxu1 %v5384_v33 }
  0x38   :  { %4796 = vmatpush3.bf16.msra.mxu0 %v5548_v3 }
  0x39   :  { %4798 = vmatprep.subr.bf16.mxu0 %v5459_v21 }
  0x3a   :  { %4782 = vmatpush3.bf16.msra.mxu1 %v5527_v48 }
  0x3b   :  { %4784 = vmatprep.subr.bf16.mxu1 %v5535_v52 }
  0x3d   :  { %4500 = vmatmul.mubr.f32.vlgmr.msra.gmra.mrb[14].mxu1 %v5383_v0 }
  0x3e   :  { %738 = vmatprep.mubr.f32.mxu1 %v5383_v0  ;;  %4786 = vmatpush1.bf16.msra.mxu1 %v5537_v56 }
  0x3f   :  { %4788 = vmatprep.subr.bf16.mxu1 %v5542_v61 }
  0x42   :  { %4790 = vmatpush1.bf16.msra.mxu1 %v5546_v2 }
  0x43   :  { %4805 = vmatprep.subr.bf16.mxu1 %v5384_v33 }
  0xec   :  { %v5562_v10 = vpop.f32.mrb[0].mxu1 }
  0xed   :  { %v5564_v11 = vpop.f32.mrb[1].mxu1 }
  0xf0   :  { %v4470_v14 = vpop.f32.mrb[2].mxu1 }
  0xf1   :  { %v5568_v15 = vadd.f32 %v4470_v14, %v56_v12  ;;  %v264_v17 = vpop.f32.mrb[3].mxu1 }
  0xf2   :  { %v265_v1 = vadd.f32 %v264_v17, %v56_v12 }
  0xf4   :  { %v4473_v18 = vpop.f32.mrb[4].mxu1 }
  0xf5   :  { %v5570_v19 = vadd.f32 %v4473_v18, %v56_v12  ;;  %v274_v20 = vpop.f32.mrb[5].mxu1 }
  0xf6   :  { %v5572_v22 = vadd.f32 %v274_v20, %v56_v12 }
  0xf8   :  { %v4476_v23 = vpop.f32.mrb[6].mxu1 }
  0xf9   :  { %v5574_v24 = vadd.f32 %v4476_v23, %v56_v12  ;;  %v284_v25 = vpop.f32.mrb[7].mxu1 }
  0xfa   :  { %v5576_v27 = vadd.f32 %v284_v25, %v56_v12 }
  0xfc   :  { %v4479_v29 = vpop.f32.mrb[8].mxu1 }
  0xfd   :  { %v5578_v30 = vadd.f32 %v4479_v29, %v56_v12  ;;  %v294_v31 = vpop.f32.mrb[9].mxu1 }
  0xfe   :  { %v5580_v34 = vadd.f32 %v294_v31, %v56_v12  ;;  %v4254_v12 = vld [vmem:[%s6063_s2 + $0x2] ss:$8 sm:$0x7] }
  0xff   :  { %v5616_v17 = vrot.slane %v4254_v12, %v47_v35  ;;  %v5624_v35 = vrot.slane %v4254_v12, %v55_v6 }
 0x106   :  { %v574_v38 = vpop.f32.mrb[0].mxu0 }
 0x107   :  { %v5099_v40 = vadd.f32 %v574_v38, %v5584_v37  ;;  %v576_v41 = vpop.f32.mrb[1].mxu0 }
 0x108   :  { %v504_v46 = vpop.f32.mrb[12].mxu1  ;;  %v5100_v47 = vadd.f32 %v576_v41, %v5587_v43 }
 0x109   :  { %v4255_v44 = vmul.f32 -1.442695, %v5099_v40  ;;  %v4490_v49 = vpop.f32.mrb[13].mxu1  ;;  %v5618_v40 = vrot.slane %v4254_v12, %v51_v36 }
 0x10a   :  { %v4256_v50 = vmul.f32 -1.442695, %v5100_v47 }
 0x10b   :  { %5170 = vpow2.f32 %v4255_v44 }
 0x10c   :  { %5172 = vpow2.f32 %v4256_v50 }
 0x110   :  { %v645_v51 = vpop.f32.mrb[14].mxu1 }
 0x111   :  { %v4501_v53 = vpop.f32.mrb[15].mxu1  ;;  %v663_v62 = vadd.f32 %v645_v51, %v5593_v59 }
 0x115   :  { %v5171_v54 = vpop.eup %5170 }
 0x116   :  { %v657_v55 = vadd.f32 1.0, %v5171_v54  ;;  %v5173_v58 = vpop.eup %5172 }
 0x117   :  { %v658_v60 = vadd.f32 1.0, %v5173_v58  ;;  %v5629_v58 = vld [vmem:[%s6063_s2 + $0x3] ss:$0 sm:$0xff] }
 0x118   :  { %5174 = vrcp.f32 %v657_v55 }
 0x119   :  { %5176 = vrcp.f32 %v658_v60  ;;  %v505_v60 = vadd.f32 %v504_v46, %v5624_v35 }
 0x122   :  { %v5175_v63 = vpop.eup %5174 }
 0x123   :  { %v664_v4 = vmul.f32 %v5175_v63, %v663_v62  ;;  %v5177_v14 = vpop.eup %5176 }
 0x124   :  { %v667_v18 = vsub.f32 1.0, %v5177_v14  ;;  %v669_v25 = vmul.f32 0.0, %v5177_v14 }
 0x125   :  { %v665_v8 = vadd.f32 %v664_v4, %v265_v1 }
 0x127   :  { %5178 = vtanh.f32 %v665_v8 }
 0x131   :  { %v5179_v20 = vpop.eup %5178 }
 0x132   :  { %v668_v23 = vmul.f32 %v5179_v20, %v667_v18 }
 0x134   :  { %v5596_v29 = vadd.f32 %v669_v25, %v668_v23 }
 0x136   :  { %4257 = vmatmul.mubr.msk.f32.vlgmr.msra.gmra.mrb[10].mxu1 %vm363_vm2, %v5596_v29  ;;  %4511 = vmatmul.mubr.msk.f32.vlgmr.msra.gmra.mrb[14].mxu0 %vm363_vm2, %v5596_v29 }
 0x137   :  { %4800 = vmatpush1.bf16.msra.mxu0 %v5465_v26  ;;  %4807 = vmatpush3.bf16.msra.mxu1 %v5506_v39 }
 0x138   :  { %4802 = vmatprep.subr.bf16.mxu0 %v5469_v28  ;;  %4808 = vmatprep.subr.bf16.mxu1 %v5384_v33 }
 0x139   :  { %904 = vmatprep.mubr.f32.mxu0 %v5383_v0  ;;  %4521 = vmatprep.mubr.msk.f32.mxu1 %vm5385_vm1, %v5383_v0 }
 0x13b   :  { %4804 = vmatpush1.bf16.msra.mxu0 %v5480_v32  ;;  %4810 = vmatpush3.bf16.msra.mxu1 %v5512_v42 }
 0x13c   :  { %4812 = vmatprep.subr.bf16.mxu0 %v5435_v7  ;;  %4819 = vmatprep.subr.bf16.mxu1 %v5384_v33 }
 0x209   :  { %v740_v31 = vpop.f32.mrb[10].mxu1  ;;  %v811_v38 = vpop.f32.mrb[14].mxu0 }
 0x20a   :  { %v5117_v41 = vadd.f32 %v740_v31, %v5616_v17  ;;  %v742_v44 = vpop.f32.mrb[11].mxu1  ;;  %v4512_v47 = vpop.f32.mrb[15].mxu0  ;;  %v829_v63 = vadd.f32 %v811_v38, %v5629_v58 }
 0x20b   :  { %v5118_v50 = vadd.f32 %v742_v44, %v5618_v40 }
 0x20c   :  { %v4259_v49 = vmul.f32 -1.442695, %v5117_v41 }
 0x20d   :  { %v4260_v51 = vmul.f32 -1.442695, %v5118_v50 }
 0x20e   :  { %5180 = vpow2.f32 %v4259_v49 }
 0x20f   :  { %5182 = vpow2.f32 %v4260_v51 }
 0x218   :  { %v5181_v53 = vpop.eup %5180 }
 0x219   :  { %v823_v54 = vadd.f32 1.0, %v5181_v53  ;;  %v5183_v55 = vpop.eup %5182 }
 0x21a   :  { %v824_v36 = vadd.f32 1.0, %v5183_v55 }
 0x21b   :  { %5184 = vrcp.f32 %v823_v54 }
 0x21c   :  { %5186 = vrcp.f32 %v824_v36 }
 0x225   :  { %v5185_v62 = vpop.eup %5184 }
 0x226   :  { %v830_v1 = vmul.f32 %v5185_v62, %v505_v60  ;;  %v5187_v8 = vpop.eup %5186 }
 0x227   :  { %v833_v14 = vsub.f32 1.0, %v5187_v8  ;;  %v835_v18 = vmul.f32 0.0, %v5187_v8 }
 0x228   :  { %v831_v4 = vadd.f32 %v830_v1, %v829_v63 }
 0x22a   :  { %5188 = vtanh.f32 %v831_v4 }
 0x234   :  { %v5189_v5 = vpop.eup %5188 }
 0x235   :  { %v834_v6 = vmul.f32 %v5189_v5, %v833_v14 }
 0x237   :  { %v5633_v20 = vadd.f32 %v835_v18, %v834_v6 }
 0x239   :  { %4261 = vmatmul.mubr.msk.f32.vlgmr.msra.gmra.mrb[16].mxu0 %vm363_vm2, %v5633_v20  ;;  %4522 = vmatmul.mubr.msk.f32.vlgmr.msra.gmra.mrb[16].mxu1 %vm363_vm2, %v5633_v20 }
 0x23a   :  { %4814 = vmatpush1.bf16.msra.mxu0 %v5438_v9  ;;  %4821 = vmatpush3.bf16.msra.mxu1 %v5520_v45 }
 0x23b   :  { %4816 = vmatprep.subr.bf16.mxu0 %v5445_v13  ;;  %4822 = vmatprep.subr.bf16.mxu1 %v5384_v33 }
 0x23c   :  { %1045 = vmatprep.mubr.f32.mxu0 %v5383_v0  ;;  %4532 = vmatprep.mubr.msk.f32.mxu1 %vm5385_vm1, %v5383_v0 }
 0x23e   :  { %4818 = vmatpush1.bf16.msra.mxu0 %v5448_v16  ;;  %4824 = vmatpush3.bf16.msra.mxu1 %v5527_v48 }
 0x23f   :  { %4826 = vmatprep.subr.bf16.mxu0 %v5535_v52  ;;  %4833 = vmatprep.subr.bf16.mxu1 %v5384_v33 }
 0x241   :  { %4263 = vmatmul.mubr.msk.f32.vlgmr.msra.gmra.mrb[2].mxu0 %vm363_vm2, %v5596_v29  ;;  %4533 = vmatmul.mubr.msk.f32.vlgmr.msra.gmra.mrb[18].mxu1 %vm363_vm2, %v5596_v29 }
 0x242   :  { %4828 = vmatpush1.bf16.msra.mxu0 %v5537_v56  ;;  %4835 = vmatpush3.bf16.msra.mxu1 %v5539_v57 }
 0x243   :  { %4830 = vmatprep.subr.bf16.mxu0 %v5542_v61  ;;  %4836 = vmatprep.subr.bf16.mxu1 %v5384_v33 }
 0x244   :  { %1211 = vmatprep.mubr.f32.mxu0 %v5383_v0  ;;  %4543 = vmatprep.mubr.msk.f32.mxu1 %vm5385_vm1, %v5383_v0 }
 0x246   :  { %4832 = vmatpush1.bf16.msra.mxu0 %v5546_v2  ;;  %4838 = vmatpush3.bf16.msra.mxu1 %v5548_v3 }
 0x247   :  { %4840 = vmatprep.subr.bf16.mxu0 %v5459_v21  ;;  %4847 = vmatprep.subr.bf16.mxu1 %v5384_v33 }
 0x30c   :  { %v977_v46 = vpop.f32.mrb[16].mxu1 }
 0x30d   :  { %v4523_v23 = vpop.f32.mrb[17].mxu1 }
 0x314   :  { %v1047_v25 = vpop.f32.mrb[2].mxu0  ;;  %v1118_v12 = vpop.f32.mrb[18].mxu1 }
 0x315   :  { %v5101_v31 = vadd.f32 %v1047_v25, %v5584_v37  ;;  %v1049_v38 = vpop.f32.mrb[3].mxu0  ;;  %v4534_v41 = vpop.f32.mrb[19].mxu1  ;;  %v1136_v55 = vadd.f32 %v1118_v12, %v5593_v59 }
 0x316   :  { %v5102_v47 = vadd.f32 %v1049_v38, %v5587_v43 }
 0x317   :  { %v4265_v44 = vmul.f32 -1.442695, %v5101_v31 }
 0x318   :  { %v4266_v49 = vmul.f32 -1.442695, %v5102_v47 }
 0x319   :  { %5190 = vpow2.f32 %v4265_v44 }
 0x31a   :  { %5192 = vpow2.f32 %v4266_v49  ;;  %v978_v49 = vadd.f32 %v977_v46, %v5624_v35 }
 0x323   :  { %v5191_v50 = vpop.eup %5190 }
 0x324   :  { %v1130_v51 = vadd.f32 1.0, %v5191_v50  ;;  %v5193_v53 = vpop.eup %5192 }
 0x325   :  { %v1131_v54 = vadd.f32 1.0, %v5193_v53 }
 0x326   :  { %5194 = vrcp.f32 %v1130_v51 }
 0x327   :  { %5196 = vrcp.f32 %v1131_v54 }
 0x330   :  { %v5195_v36 = vpop.eup %5194 }
 0x331   :  { %v1137_v60 = vmul.f32 %v5195_v36, %v1136_v55  ;;  %v5197_v63 = vpop.eup %5196 }
 0x332   :  { %v1140_v1 = vsub.f32 1.0, %v5197_v63  ;;  %v1142_v14 = vmul.f32 %v5197_v63, %v5596_v29 }
 0x333   :  { %v1138_v62 = vadd.f32 %v1137_v60, %v5568_v15 }
 0x335   :  { %5198 = vtanh.f32 %v1138_v62 }
 0x33f   :  { %v5199_v4 = vpop.eup %5198 }
 0x340   :  { %v1141_v8 = vmul.f32 %v5199_v4, %v1140_v1 }
 0x342   :  { %v5670_v5 = vadd.f32 %v1142_v14, %v1141_v8 }
 0x344   :  { %4267 = vmatmul.mubr.msk.f32.vlgmr.msra.gmra.mrb[16].mxu0 %vm363_vm2, %v5670_v5  ;;  %4544 = vmatmul.mubr.msk.f32.vlgmr.msra.gmra.mrb[20].mxu1 %vm363_vm2, %v5670_v5 }
 0x345   :  { %4842 = vmatpush1.bf16.msra.mxu0 %v5465_v26  ;;  %4849 = vmatpush3.bf16.msra.mxu1 %v5506_v39 }
 0x346   :  { %4844 = vmatprep.subr.bf16.mxu0 %v5469_v28  ;;  %4850 = vmatprep.subr.bf16.mxu1 %v5384_v33 }
 0x347   :  { %1377 = vmatprep.mubr.f32.mxu0 %v5383_v0  ;;  %4554 = vmatprep.mubr.msk.f32.mxu1 %vm5385_vm1, %v5383_v0 }
 0x349   :  { %4846 = vmatpush1.bf16.msra.mxu0 %v5480_v32  ;;  %4852 = vmatpush3.bf16.msra.mxu1 %v5512_v42 }
 0x34a   :  { %4854 = vmatprep.subr.bf16.mxu0 %v5435_v7  ;;  %4861 = vmatprep.subr.bf16.mxu1 %v5384_v33 }
 0x417   :  { %v1213_v15 = vpop.f32.mrb[16].mxu0  ;;  %v1284_v29 = vpop.f32.mrb[20].mxu1 }
 0x418   :  { %v5119_v6 = vadd.f32 %v1213_v15, %v5616_v17  ;;  %v1215_v18 = vpop.f32.mrb[17].mxu0  ;;  %v4545_v23 = vpop.f32.mrb[21].mxu1  ;;  %v1302_v51 = vadd.f32 %v1284_v29, %v5629_v58 }
 0x419   :  { %v5120_v12 = vadd.f32 %v1215_v18, %v5618_v40 }
 0x41a   :  { %v4269_v25 = vmul.f32 -1.442695, %v5119_v6 }
 0x41b   :  { %v4270_v31 = vmul.f32 -1.442695, %v5120_v12 }
 0x41c   :  { %5200 = vpow2.f32 %v4269_v25 }
 0x41d   :  { %5202 = vpow2.f32 %v4270_v31 }
 0x426   :  { %v5201_v38 = vpop.eup %5200 }
 0x427   :  { %v1296_v41 = vadd.f32 1.0, %v5201_v38  ;;  %v5203_v44 = vpop.eup %5202 }
 0x428   :  { %v1297_v47 = vadd.f32 1.0, %v5203_v44 }
 0x429   :  { %5204 = vrcp.f32 %v1296_v41 }
 0x42a   :  { %5206 = vrcp.f32 %v1297_v47 }
 0x433   :  { %v5205_v50 = vpop.eup %5204 }
 0x434   :  { %v1303_v53 = vmul.f32 %v5205_v50, %v978_v49  ;;  %v5207_v55 = vpop.eup %5206 }
 0x435   :  { %v1306_v36 = vsub.f32 1.0, %v5207_v55  ;;  %v1308_v63 = vmul.f32 %v5207_v55, %v5633_v20 }
 0x436   :  { %v1304_v54 = vadd.f32 %v1303_v53, %v1302_v51 }
 0x438   :  { %5208 = vtanh.f32 %v1304_v54 }
 0x442   :  { %v5209_v60 = vpop.eup %5208 }
 0x443   :  { %v1307_v62 = vmul.f32 %v5209_v60, %v1306_v36 }
 0x445   :  { %v5692_v1 = vadd.f32 %v1308_v63, %v1307_v62 }
 0x447   :  { %4271 = vmatmul.mubr.msk.f32.vlgmr.msra.gmra.mrb[18].mxu0 %vm363_vm2, %v5692_v1  ;;  %4555 = vmatmul.mubr.msk.f32.vlgmr.msra.gmra.mrb[22].mxu1 %vm363_vm2, %v5692_v1 }
 0x448   :  { %4856 = vmatpush1.bf16.msra.mxu0 %v5438_v9  ;;  %4863 = vmatpush3.bf16.msra.mxu1 %v5520_v45 }
 0x449   :  { %4858 = vmatprep.subr.bf16.mxu0 %v5445_v13  ;;  %4864 = vmatprep.subr.bf16.mxu1 %v5384_v33 }
 0x44a   :  { %1518 = vmatprep.mubr.f32.mxu0 %v5383_v0  ;;  %4565 = vmatprep.mubr.msk.f32.mxu1 %vm5385_vm1, %v5383_v0 }
 0x44c   :  { %4860 = vmatpush1.bf16.msra.mxu0 %v5448_v16  ;;  %4866 = vmatpush3.bf16.msra.mxu1 %v5527_v48 }
 0x44d   :  { %4868 = vmatprep.subr.bf16.mxu0 %v5535_v52  ;;  %4875 = vmatprep.subr.bf16.mxu1 %v5384_v33 }
 0x44f   :  { %4273 = vmatmul.mubr.msk.f32.vlgmr.msra.gmra.mrb[4].mxu0 %vm363_vm2, %v5670_v5  ;;  %4566 = vmatmul.mubr.msk.f32.vlgmr.msra.gmra.mrb[24].mxu1 %vm363_vm2, %v5670_v5 }
 0x450   :  { %4870 = vmatpush1.bf16.msra.mxu0 %v5537_v56  ;;  %4877 = vmatpush3.bf16.msra.mxu1 %v5539_v57 }
 0x451   :  { %4872 = vmatprep.subr.bf16.mxu0 %v5542_v61  ;;  %4878 = vmatprep.subr.bf16.mxu1 %v5384_v33 }
 0x452   :  { %1684 = vmatprep.mubr.f32.mxu0 %v5383_v0  ;;  %4576 = vmatprep.mubr.msk.f32.mxu1 %vm5385_vm1, %v5383_v0 }
 0x454   :  { %4874 = vmatpush1.bf16.msra.mxu0 %v5546_v2  ;;  %4880 = vmatpush3.bf16.msra.mxu1 %v5548_v3 }
 0x455   :  { %4882 = vmatprep.subr.bf16.mxu0 %v5459_v21  ;;  %4889 = vmatprep.subr.bf16.mxu1 %v5384_v33 }
 0x51a   :  { %v1450_v20 = vpop.f32.mrb[22].mxu1 }
 0x51b   :  { %v4556_v46 = vpop.f32.mrb[23].mxu1 }
 0x522   :  { %v1520_v4 = vpop.f32.mrb[4].mxu0  ;;  %v1591_v8 = vpop.f32.mrb[24].mxu1 }
 0x523   :  { %v5103_v14 = vadd.f32 %v1520_v4, %v5584_v37  ;;  %v1522_v15 = vpop.f32.mrb[5].mxu0  ;;  %v4567_v29 = vpop.f32.mrb[25].mxu1  ;;  %v1609_v41 = vadd.f32 %v1591_v8, %v5593_v59 }
 0x524   :  { %v5104_v18 = vadd.f32 %v1522_v15, %v5587_v43 }
 0x525   :  { %v4275_v6 = vmul.f32 -1.442695, %v5103_v14 }
 0x526   :  { %v4276_v23 = vmul.f32 -1.442695, %v5104_v18  ;;  %v1451_v18 = vadd.f32 %v1450_v20, %v5624_v35 }
 0x527   :  { %5210 = vpow2.f32 %v4275_v6 }
 0x528   :  { %5212 = vpow2.f32 %v4276_v23 }
 0x531   :  { %v5211_v25 = vpop.eup %5210 }
 0x532   :  { %v1603_v12 = vadd.f32 1.0, %v5211_v25  ;;  %v5213_v31 = vpop.eup %5212 }
 0x533   :  { %v1604_v38 = vadd.f32 1.0, %v5213_v31 }
 0x534   :  { %5214 = vrcp.f32 %v1603_v12 }
 0x535   :  { %5216 = vrcp.f32 %v1604_v38 }
 0x53e   :  { %v5215_v44 = vpop.eup %5214 }
 0x53f   :  { %v1610_v47 = vmul.f32 %v5215_v44, %v1609_v41  ;;  %v5217_v50 = vpop.eup %5216 }
 0x540   :  { %v1613_v51 = vsub.f32 1.0, %v5217_v50  ;;  %v1615_v55 = vmul.f32 %v5217_v50, %v5670_v5 }
 0x541   :  { %v1611_v49 = vadd.f32 %v1610_v47, %v5572_v22 }
 0x543   :  { %5218 = vtanh.f32 %v1611_v49 }
 0x54d   :  { %v5219_v53 = vpop.eup %5218 }
 0x54e   :  { %v1614_v54 = vmul.f32 %v5219_v53, %v1613_v51 }
 0x550   :  { %v5729_v36 = vadd.f32 %v1615_v55, %v1614_v54 }
 0x552   :  { %4277 = vmatmul.mubr.msk.f32.vlgmr.msra.gmra.mrb[18].mxu0 %vm363_vm2, %v5729_v36  ;;  %4577 = vmatmul.mubr.msk.f32.vlgmr.msra.gmra.mrb[26].mxu1 %vm363_vm2, %v5729_v36 }
 0x553   :  { %4884 = vmatpush1.bf16.msra.mxu0 %v5465_v26  ;;  %4891 = vmatpush3.bf16.msra.mxu1 %v5506_v39 }
 0x554   :  { %4886 = vmatprep.subr.bf16.mxu0 %v5469_v28  ;;  %4892 = vmatprep.subr.bf16.mxu1 %v5384_v33 }
 0x555   :  { %1850 = vmatprep.mubr.f32.mxu0 %v5383_v0  ;;  %4587 = vmatprep.mubr.msk.f32.mxu1 %vm5385_vm1, %v5383_v0 }
 0x557   :  { %4888 = vmatpush1.bf16.msra.mxu0 %v5480_v32  ;;  %4894 = vmatpush3.bf16.msra.mxu1 %v5512_v42 }
 0x558   :  { %4896 = vmatprep.subr.bf16.mxu0 %v5435_v7  ;;  %4903 = vmatprep.subr.bf16.mxu1 %v5384_v33 }
 0x625   :  { %v1686_v22 = vpop.f32.mrb[18].mxu0  ;;  %v1757_v5 = vpop.f32.mrb[26].mxu1 }
 0x626   :  { %v5121_v60 = vadd.f32 %v1686_v22, %v5616_v17  ;;  %v1688_v62 = vpop.f32.mrb[19].mxu0  ;;  %v4578_v63 = vpop.f32.mrb[27].mxu1  ;;  %v1775_v25 = vadd.f32 %v1757_v5, %v5629_v58 }
 0x627   :  { %v5122_v4 = vadd.f32 %v1688_v62, %v5618_v40 }
 0x628   :  { %v4279_v46 = vmul.f32 -1.442695, %v5121_v60 }
 0x629   :  { %v4280_v8 = vmul.f32 -1.442695, %v5122_v4 }
 0x62a   :  { %5220 = vpow2.f32 %v4279_v46 }
 0x62b   :  { %5222 = vpow2.f32 %v4280_v8 }
 0x634   :  { %v5221_v14 = vpop.eup %5220 }
 0x635   :  { %v1769_v15 = vadd.f32 1.0, %v5221_v14  ;;  %v5223_v29 = vpop.eup %5222 }
 0x636   :  { %v1770_v6 = vadd.f32 1.0, %v5223_v29 }
 0x637   :  { %5224 = vrcp.f32 %v1769_v15 }
 0x638   :  { %5226 = vrcp.f32 %v1770_v6 }
 0x641   :  { %v5225_v23 = vpop.eup %5224 }
 0x642   :  { %v1776_v12 = vmul.f32 %v5225_v23, %v1451_v18  ;;  %v5227_v38 = vpop.eup %5226 }
 0x643   :  { %v1779_v41 = vsub.f32 1.0, %v5227_v38  ;;  %v1781_v49 = vmul.f32 %v5227_v38, %v5692_v1 }
 0x644   :  { %v1777_v31 = vadd.f32 %v1776_v12, %v1775_v25 }
 0x646   :  { %5228 = vtanh.f32 %v1777_v31 }
 0x650   :  { %v5229_v44 = vpop.eup %5228 }
 0x651   :  { %v1780_v47 = vmul.f32 %v5229_v44, %v1779_v41 }
 0x653   :  { %v5751_v50 = vadd.f32 %v1781_v49, %v1780_v47 }
 0x655   :  { %4281 = vmatmul.mubr.msk.f32.vlgmr.msra.gmra.mrb[20].mxu0 %vm363_vm2, %v5751_v50  ;;  %4588 = vmatmul.mubr.msk.f32.vlgmr.msra.gmra.mrb[28].mxu1 %vm363_vm2, %v5751_v50 }
 0x656   :  { %4898 = vmatpush1.bf16.msra.mxu0 %v5438_v9  ;;  %4905 = vmatpush3.bf16.msra.mxu1 %v5520_v45 }
 0x657   :  { %4900 = vmatprep.subr.bf16.mxu0 %v5445_v13  ;;  %4906 = vmatprep.subr.bf16.mxu1 %v5384_v33 }
 0x658   :  { %1991 = vmatprep.mubr.f32.mxu0 %v5383_v0  ;;  %4598 = vmatprep.mubr.msk.f32.mxu1 %vm5385_vm1, %v5383_v0 }
 0x65a   :  { %4902 = vmatpush1.bf16.msra.mxu0 %v5448_v16  ;;  %4908 = vmatpush3.bf16.msra.mxu1 %v5527_v48 }
 0x65b   :  { %4910 = vmatprep.subr.bf16.mxu0 %v5535_v52  ;;  %4917 = vmatprep.subr.bf16.mxu1 %v5384_v33 }
 0x65d   :  { %4283 = vmatmul.mubr.msk.f32.vlgmr.msra.gmra.mrb[6].mxu0 %vm363_vm2, %v5729_v36  ;;  %4599 = vmatmul.mubr.msk.f32.vlgmr.msra.gmra.mrb[30].mxu1 %vm363_vm2, %v5729_v36 }
 0x65e   :  { %4912 = vmatpush1.bf16.msra.mxu0 %v5537_v56  ;;  %4919 = vmatpush3.bf16.msra.mxu1 %v5539_v57 }
 0x65f   :  { %4914 = vmatprep.subr.bf16.mxu0 %v5542_v61  ;;  %4920 = vmatprep.subr.bf16.mxu1 %v5384_v33 }
 0x660   :  { %2157 = vmatprep.mubr.f32.mxu0 %v5383_v0  ;;  %4609 = vmatprep.mubr.msk.f32.mxu1 %vm5385_vm1, %v5383_v0 }
 0x662   :  { %4916 = vmatpush1.bf16.msra.mxu0 %v5546_v2  ;;  %4922 = vmatpush3.bf16.msra.mxu1 %v5548_v3 }
 0x663   :  { %4924 = vmatprep.subr.bf16.mxu0 %v5459_v21  ;;  %4931 = vmatprep.subr.bf16.mxu1 %v5384_v33 }
 0x728   :  { %v1923_v1 = vpop.f32.mrb[28].mxu1 }
 0x729   :  { %v4589_v20 = vpop.f32.mrb[29].mxu1 }
 0x730   :  { %v1993_v51 = vpop.f32.mrb[6].mxu0  ;;  %v2064_v53 = vpop.f32.mrb[30].mxu1 }
 0x731   :  { %v5105_v54 = vadd.f32 %v1993_v51, %v5584_v37  ;;  %v1995_v55 = vpop.f32.mrb[7].mxu0  ;;  %v4600_v22 = vpop.f32.mrb[31].mxu1  ;;  %v2082_v14 = vadd.f32 %v2064_v53, %v5593_v59 }
 0x732   :  { %v5106_v60 = vadd.f32 %v1995_v55, %v5587_v43 }
 0x733   :  { %v4285_v5 = vmul.f32 -1.442695, %v5105_v54 }
 0x734   :  { %v4286_v62 = vmul.f32 -1.442695, %v5106_v60 }
 0x735   :  { %5230 = vpow2.f32 %v4285_v5  ;;  %v1924_v5 = vadd.f32 %v1923_v1, %v5624_v35 }
 0x736   :  { %5232 = vpow2.f32 %v4286_v62 }
 0x73f   :  { %v5231_v63 = vpop.eup %5230 }
 0x740   :  { %v2076_v46 = vadd.f32 1.0, %v5231_v63  ;;  %v5233_v4 = vpop.eup %5232 }
 0x741   :  { %v2077_v8 = vadd.f32 1.0, %v5233_v4 }
 0x742   :  { %5234 = vrcp.f32 %v2076_v46 }
 0x743   :  { %5236 = vrcp.f32 %v2077_v8 }
 0x74c   :  { %v5235_v15 = vpop.eup %5234 }
 0x74d   :  { %v2083_v29 = vmul.f32 %v5235_v15, %v2082_v14  ;;  %v5237_v18 = vpop.eup %5236 }
 0x74e   :  { %v2086_v23 = vsub.f32 1.0, %v5237_v18  ;;  %v2088_v31 = vmul.f32 %v5237_v18, %v5729_v36 }
 0x74f   :  { %v2084_v6 = vadd.f32 %v2083_v29, %v5570_v19 }
 0x751   :  { %5238 = vtanh.f32 %v2084_v6 }
 0x75b   :  { %v5239_v25 = vpop.eup %5238 }
 0x75c   :  { %v2087_v12 = vmul.f32 %v5239_v25, %v2086_v23 }
 0x75e   :  { %v5788_v38 = vadd.f32 %v2088_v31, %v2087_v12 }
 0x760   :  { %4287 = vmatmul.mubr.msk.f32.vlgmr.msra.gmra.mrb[20].mxu0 %vm363_vm2, %v5788_v38  ;;  %4610 = vmatmul.mubr.msk.f32.vlgmr.msra.gmra.mrb[32].mxu1 %vm363_vm2, %v5788_v38 }
 0x761   :  { %4926 = vmatpush1.bf16.msra.mxu0 %v5465_v26  ;;  %4933 = vmatpush3.bf16.msra.mxu1 %v5506_v39 }
 0x762   :  { %4928 = vmatprep.subr.bf16.mxu0 %v5469_v28  ;;  %4934 = vmatprep.subr.bf16.mxu1 %v5384_v33 }
 0x763   :  { %2323 = vmatprep.mubr.f32.mxu0 %v5383_v0  ;;  %4620 = vmatprep.mubr.msk.f32.mxu1 %vm5385_vm1, %v5383_v0 }
 0x765   :  { %4930 = vmatpush1.bf16.msra.mxu0 %v5480_v32  ;;  %4936 = vmatpush3.bf16.msra.mxu1 %v5512_v42 }
 0x766   :  { %4938 = vmatprep.subr.bf16.mxu0 %v5435_v7  ;;  %4945 = vmatprep.subr.bf16.mxu1 %v5384_v33 }
 0x833   :  { %v2159_v19 = vpop.f32.mrb[20].mxu0  ;;  %v2230_v36 = vpop.f32.mrb[32].mxu1 }
 0x834   :  { %v5123_v41 = vadd.f32 %v2159_v19, %v5616_v17  ;;  %v2161_v44 = vpop.f32.mrb[21].mxu0  ;;  %v4611_v47 = vpop.f32.mrb[33].mxu1  ;;  %v2248_v62 = vadd.f32 %v2230_v36, %v5629_v58 }
 0x835   :  { %v5124_v20 = vadd.f32 %v2161_v44, %v5618_v40 }
 0x836   :  { %v4289_v49 = vmul.f32 -1.442695, %v5123_v41 }
 0x837   :  { %v4290_v51 = vmul.f32 -1.442695, %v5124_v20 }
 0x838   :  { %5240 = vpow2.f32 %v4289_v49 }
 0x839   :  { %5242 = vpow2.f32 %v4290_v51 }
 0x842   :  { %v5241_v53 = vpop.eup %5240 }
 0x843   :  { %v2242_v54 = vadd.f32 1.0, %v5241_v53  ;;  %v5243_v55 = vpop.eup %5242 }
 0x844   :  { %v2243_v22 = vadd.f32 1.0, %v5243_v55 }
 0x845   :  { %5244 = vrcp.f32 %v2242_v54 }
 0x846   :  { %5246 = vrcp.f32 %v2243_v22 }
 0x84f   :  { %v5245_v60 = vpop.eup %5244 }
 0x850   :  { %v2249_v63 = vmul.f32 %v5245_v60, %v1924_v5  ;;  %v5247_v4 = vpop.eup %5246 }
 0x851   :  { %v2252_v8 = vsub.f32 1.0, %v5247_v4  ;;  %v2254_v29 = vmul.f32 %v5247_v4, %v5751_v50 }
 0x852   :  { %v2250_v46 = vadd.f32 %v2249_v63, %v2248_v62 }
 0x854   :  { %5248 = vtanh.f32 %v2250_v46 }
 0x85e   :  { %v5249_v14 = vpop.eup %5248 }
 0x85f   :  { %v2253_v15 = vmul.f32 %v5249_v14, %v2252_v8 }
 0x861   :  { %v5810_v6 = vadd.f32 %v2254_v29, %v2253_v15 }
 0x863   :  { %4291 = vmatmul.mubr.msk.f32.vlgmr.msra.gmra.mrb[22].mxu0 %vm363_vm2, %v5810_v6  ;;  %4621 = vmatmul.mubr.msk.f32.vlgmr.msra.gmra.mrb[34].mxu1 %vm363_vm2, %v5810_v6 }
 0x864   :  { %4940 = vmatpush1.bf16.msra.mxu0 %v5438_v9  ;;  %4947 = vmatpush3.bf16.msra.mxu1 %v5520_v45 }
 0x865   :  { %4942 = vmatprep.subr.bf16.mxu0 %v5445_v13  ;;  %4948 = vmatprep.subr.bf16.mxu1 %v5384_v33 }
 0x866   :  { %2464 = vmatprep.mubr.f32.mxu0 %v5383_v0  ;;  %4631 = vmatprep.mubr.msk.f32.mxu1 %vm5385_vm1, %v5383_v0 }
 0x868   :  { %4944 = vmatpush1.bf16.msra.mxu0 %v5448_v16  ;;  %4950 = vmatpush3.bf16.msra.mxu1 %v5527_v48 }
 0x869   :  { %4952 = vmatprep.subr.bf16.mxu0 %v5535_v52  ;;  %4959 = vmatprep.subr.bf16.mxu1 %v5384_v33 }
 0x86b   :  { %4293 = vmatmul.mubr.msk.f32.vlgmr.msra.gmra.mrb[8].mxu0 %vm363_vm2, %v5788_v38  ;;  %4632 = vmatmul.mubr.msk.f32.vlgmr.msra.gmra.mrb[36].mxu1 %vm363_vm2, %v5788_v38 }
 0x86c   :  { %4954 = vmatpush1.bf16.msra.mxu0 %v5537_v56  ;;  %4961 = vmatpush3.bf16.msra.mxu1 %v5539_v57 }
 0x86d   :  { %4956 = vmatprep.subr.bf16.mxu0 %v5542_v61  ;;  %4962 = vmatprep.subr.bf16.mxu1 %v5384_v33 }
 0x86e   :  { %2630 = vmatprep.mubr.f32.mxu0 %v5383_v0  ;;  %4642 = vmatprep.mubr.msk.f32.mxu1 %vm5385_vm1, %v5383_v0 }
 0x870   :  { %4958 = vmatpush1.bf16.msra.mxu0 %v5546_v2  ;;  %4964 = vmatpush3.bf16.msra.mxu1 %v5548_v3 }
 0x871   :  { %4966 = vmatprep.subr.bf16.mxu0 %v5459_v21  ;;  %4973 = vmatprep.subr.bf16.mxu1 %v5384_v33 }
 0x936   :  { %v2396_v50 = vpop.f32.mrb[34].mxu1 }
 0x937   :  { %v4622_v1 = vpop.f32.mrb[35].mxu1 }
 0x93e   :  { %v2466_v18 = vpop.f32.mrb[8].mxu0  ;;  %v2537_v23 = vpop.f32.mrb[36].mxu1 }
 0x93f   :  { %v5107_v25 = vadd.f32 %v2466_v18, %v5584_v37  ;;  %v2468_v12 = vpop.f32.mrb[9].mxu0  ;;  %v4633_v31 = vpop.f32.mrb[37].mxu1  ;;  %v2555_v51 = vadd.f32 %v2537_v23, %v5593_v59 }
 0x940   :  { %v5108_v36 = vadd.f32 %v2468_v12, %v5587_v43  ;;  %v2397_v31 = vadd.f32 %v2396_v50, %v5624_v35 }
 0x941   :  { %v4295_v19 = vmul.f32 -1.442695, %v5107_v25 }
 0x942   :  { %v4296_v41 = vmul.f32 -1.442695, %v5108_v36 }
 0x943   :  { %5250 = vpow2.f32 %v4295_v19 }
 0x944   :  { %5252 = vpow2.f32 %v4296_v41 }
 0x94d   :  { %v5251_v44 = vpop.eup %5250 }
 0x94e   :  { %v2549_v47 = vadd.f32 1.0, %v5251_v44  ;;  %v5253_v49 = vpop.eup %5252 }
 0x94f   :  { %v2550_v20 = vadd.f32 1.0, %v5253_v49 }
 0x950   :  { %5254 = vrcp.f32 %v2549_v47 }
 0x951   :  { %5256 = vrcp.f32 %v2550_v20 }
 0x95a   :  { %v5255_v53 = vpop.eup %5254 }
 0x95b   :  { %v2556_v54 = vmul.f32 %v5255_v53, %v2555_v51  ;;  %v5257_v22 = vpop.eup %5256 }
 0x95c   :  { %v2559_v5 = vsub.f32 1.0, %v5257_v22  ;;  %v2561_v63 = vmul.f32 %v5257_v22, %v5788_v38 }
 0x95d   :  { %v2557_v55 = vadd.f32 %v2556_v54, %v5576_v27 }
 0x95f   :  { %5258 = vtanh.f32 %v2557_v55 }
 0x969   :  { %v5259_v60 = vpop.eup %5258 }
 0x96a   :  { %v2560_v62 = vmul.f32 %v5259_v60, %v2559_v5 }
 0x96c   :  { %v5847_v46 = vadd.f32 %v2561_v63, %v2560_v62 }
 0x96e   :  { %4297 = vmatmul.mubr.msk.f32.vlgmr.msra.gmra.mrb[22].mxu0 %vm363_vm2, %v5847_v46  ;;  %4643 = vmatmul.mubr.msk.f32.vlgmr.msra.gmra.mrb[38].mxu1 %vm363_vm2, %v5847_v46 }
 0x96f   :  { %4968 = vmatpush1.bf16.msra.mxu0 %v5465_v26  ;;  %4975 = vmatpush3.bf16.msra.mxu1 %v5506_v39 }
 0x970   :  { %4970 = vmatprep.subr.bf16.mxu0 %v5469_v28  ;;  %4976 = vmatprep.subr.bf16.mxu1 %v5384_v33 }
 0x971   :  { %2796 = vmatprep.mubr.f32.mxu0 %v5383_v0  ;;  %4653 = vmatprep.mubr.msk.f32.mxu1 %vm5385_vm1, %v5383_v0 }
 0x973   :  { %4972 = vmatpush1.bf16.msra.mxu0 %v5480_v32  ;;  %4978 = vmatpush3.bf16.msra.mxu1 %v5512_v42 }
 0x974   :  { %4980 = vmatprep.subr.bf16.mxu0 %v5435_v7  ;;  %4987 = vmatprep.subr.bf16.mxu1 %v5384_v33 }
 0xa41   :  { %v2632_v27 = vpop.f32.mrb[22].mxu0  ;;  %v2703_v38 = vpop.f32.mrb[38].mxu1 }
 0xa42   :  { %v5125_v4 = vadd.f32 %v2632_v27, %v5616_v17  ;;  %v2634_v8 = vpop.f32.mrb[23].mxu0  ;;  %v4644_v14 = vpop.f32.mrb[39].mxu1  ;;  %v2721_v36 = vadd.f32 %v2703_v38, %v5629_v58 }
 0xa43   :  { %v5126_v29 = vadd.f32 %v2634_v8, %v5618_v40 }
 0xa44   :  { %v4299_v15 = vmul.f32 -1.442695, %v5125_v4 }
 0xa45   :  { %v4300_v1 = vmul.f32 -1.442695, %v5126_v29 }
 0xa46   :  { %5260 = vpow2.f32 %v4299_v15 }
 0xa47   :  { %5262 = vpow2.f32 %v4300_v1 }
 0xa50   :  { %v5261_v18 = vpop.eup %5260 }
 0xa51   :  { %v2715_v23 = vadd.f32 1.0, %v5261_v18  ;;  %v5263_v25 = vpop.eup %5262 }
 0xa52   :  { %v2716_v12 = vadd.f32 1.0, %v5263_v25 }
 0xa53   :  { %5264 = vrcp.f32 %v2715_v23 }
 0xa54   :  { %5266 = vrcp.f32 %v2716_v12 }
 0xa5d   :  { %v5265_v19 = vpop.eup %5264 }
 0xa5e   :  { %v2722_v41 = vmul.f32 %v5265_v19, %v2397_v31  ;;  %v5267_v47 = vpop.eup %5266 }
 0xa5f   :  { %v2725_v49 = vsub.f32 1.0, %v5267_v47  ;;  %v2727_v53 = vmul.f32 %v5267_v47, %v5810_v6 }
 0xa60   :  { %v2723_v44 = vadd.f32 %v2722_v41, %v2721_v36 }
 0xa62   :  { %5268 = vtanh.f32 %v2723_v44 }
 0xa6c   :  { %v5269_v20 = vpop.eup %5268 }
 0xa6d   :  { %v2726_v51 = vmul.f32 %v5269_v20, %v2725_v49 }
 0xa6f   :  { %v5869_v54 = vadd.f32 %v2727_v53, %v2726_v51 }
 0xa71   :  { %4301 = vmatmul.mubr.msk.f32.vlgmr.msra.gmra.mrb[24].mxu0 %vm363_vm2, %v5869_v54  ;;  %4654 = vmatmul.mubr.msk.f32.vlgmr.msra.gmra.mrb[40].mxu1 %vm363_vm2, %v5869_v54 }
 0xa72   :  { %4982 = vmatpush1.bf16.msra.mxu0 %v5438_v9  ;;  %4989 = vmatpush3.bf16.msra.mxu1 %v5520_v45 }
 0xa73   :  { %4984 = vmatprep.subr.bf16.mxu0 %v5445_v13  ;;  %4990 = vmatprep.subr.bf16.mxu1 %v5384_v33 }
 0xa74   :  { %2937 = vmatprep.mubr.f32.mxu0 %v5383_v0  ;;  %4664 = vmatprep.mubr.msk.f32.mxu1 %vm5385_vm1, %v5383_v0 }
 0xa76   :  { %4986 = vmatpush1.bf16.msra.mxu0 %v5448_v16  ;;  %4992 = vmatpush3.bf16.msra.mxu1 %v5527_v48 }
 0xa77   :  { %4994 = vmatprep.subr.bf16.mxu0 %v5535_v52  ;;  %5001 = vmatprep.subr.bf16.mxu1 %v5384_v33 }
 0xa79   :  { %4303 = vmatmul.mubr.msk.f32.vlgmr.msra.gmra.mrb[10].mxu0 %vm363_vm2, %v5847_v46  ;;  %4665 = vmatmul.mubr.msk.f32.vlgmr.msra.gmra.mrb[42].mxu1 %vm363_vm2, %v5847_v46 }
 0xa7a   :  { %4996 = vmatpush1.bf16.msra.mxu0 %v5537_v56  ;;  %5003 = vmatpush3.bf16.msra.mxu1 %v5539_v57 }
 0xa7b   :  { %4998 = vmatprep.subr.bf16.mxu0 %v5542_v61  ;;  %5004 = vmatprep.subr.bf16.mxu1 %v5384_v33 }
 0xa7c   :  { %3103 = vmatprep.mubr.f32.mxu0 %v5383_v0  ;;  %4675 = vmatprep.mubr.msk.f32.mxu1 %vm5385_vm1, %v5383_v0 }
 0xa7e   :  { %5000 = vmatpush1.bf16.msra.mxu0 %v5546_v2  ;;  %5006 = vmatpush3.bf16.msra.mxu1 %v5548_v3 }
 0xa7f   :  { %5008 = vmatprep.subr.bf16.mxu0 %v5459_v21  ;;  %5015 = vmatprep.subr.bf16.mxu1 %v5384_v33 }
 0xb44   :  { %v2869_v6 = vpop.f32.mrb[40].mxu1 }
 0xb45   :  { %v4655_v50 = vpop.f32.mrb[41].mxu1 }
 0xb4c   :  { %v2939_v55 = vpop.f32.mrb[10].mxu0  ;;  %v3010_v22 = vpop.f32.mrb[42].mxu1 }
 0xb4d   :  { %v5109_v5 = vadd.f32 %v2939_v55, %v5584_v37  ;;  %v2941_v60 = vpop.f32.mrb[11].mxu0  ;;  %v4666_v62 = vpop.f32.mrb[43].mxu1  ;;  %v3028_v29 = vadd.f32 %v3010_v22, %v5593_v59 }
 0xb4e   :  { %v5110_v27 = vadd.f32 %v2941_v60, %v5587_v43 }
 0xb4f   :  { %v4305_v63 = vmul.f32 -1.442695, %v5109_v5  ;;  %v2870_v5 = vadd.f32 %v2869_v6, %v5624_v35 }
 0xb50   :  { %v4306_v38 = vmul.f32 -1.442695, %v5110_v27 }
 0xb51   :  { %5270 = vpow2.f32 %v4305_v63 }
 0xb52   :  { %5272 = vpow2.f32 %v4306_v38 }
 0xb5b   :  { %v5271_v4 = vpop.eup %5270 }
 0xb5c   :  { %v3022_v8 = vadd.f32 1.0, %v5271_v4  ;;  %v5273_v14 = vpop.eup %5272 }
 0xb5d   :  { %v3023_v15 = vadd.f32 1.0, %v5273_v14 }
 0xb5e   :  { %5274 = vrcp.f32 %v3022_v8 }
 0xb5f   :  { %5276 = vrcp.f32 %v3023_v15 }
 0xb68   :  { %v5275_v1 = vpop.eup %5274 }
 0xb69   :  { %v3029_v18 = vmul.f32 %v5275_v1, %v3028_v29  ;;  %v5277_v25 = vpop.eup %5276 }
 0xb6a   :  { %v3032_v12 = vsub.f32 1.0, %v5277_v25  ;;  %v3034_v36 = vmul.f32 %v5277_v25, %v5847_v46 }
 0xb6b   :  { %v3030_v23 = vadd.f32 %v3029_v18, %v5574_v24 }
 0xb6d   :  { %5278 = vtanh.f32 %v3030_v23 }
 0xb77   :  { %v5279_v31 = vpop.eup %5278 }
 0xb78   :  { %v3033_v19 = vmul.f32 %v5279_v31, %v3032_v12 }
 0xb7a   :  { %v5906_v41 = vadd.f32 %v3034_v36, %v3033_v19 }
 0xb7c   :  { %4307 = vmatmul.mubr.msk.f32.vlgmr.msra.gmra.mrb[24].mxu0 %vm363_vm2, %v5906_v41  ;;  %4676 = vmatmul.mubr.msk.f32.vlgmr.msra.gmra.mrb[44].mxu1 %vm363_vm2, %v5906_v41 }
 0xb7d   :  { %5010 = vmatpush1.bf16.msra.mxu0 %v5465_v26  ;;  %5017 = vmatpush3.bf16.msra.mxu1 %v5506_v39 }
 0xb7e   :  { %5012 = vmatprep.subr.bf16.mxu0 %v5469_v28  ;;  %5018 = vmatprep.subr.bf16.mxu1 %v5384_v33 }
 0xb7f   :  { %3269 = vmatprep.mubr.f32.mxu0 %v5383_v0  ;;  %4686 = vmatprep.mubr.msk.f32.mxu1 %vm5385_vm1, %v5383_v0 }
 0xb81   :  { %5014 = vmatpush1.bf16.msra.mxu0 %v5480_v32  ;;  %5020 = vmatpush3.bf16.msra.mxu1 %v5512_v42 }
 0xb82   :  { %5022 = vmatprep.subr.bf16.mxu0 %v5435_v7  ;;  %5029 = vmatprep.subr.bf16.mxu1 %v5384_v33 }
 0xc4f   :  { %v3105_v24 = vpop.f32.mrb[24].mxu0  ;;  %v3176_v59 = vpop.f32.mrb[44].mxu1 }
 0xc50   :  { %v5127_v46 = vadd.f32 %v3105_v24, %v5616_v17  ;;  %v3107_v44 = vpop.f32.mrb[25].mxu0  ;;  %v4677_v47 = vpop.f32.mrb[45].mxu1  ;;  %v3194_v62 = vadd.f32 %v3176_v59, %v5629_v58 }
 0xc51   :  { %v5128_v20 = vadd.f32 %v3107_v44, %v5618_v40 }
 0xc52   :  { %v4309_v49 = vmul.f32 -1.442695, %v5127_v46  ;;  %v5965_v46 = vld [vmem:[%s6063_s2 + $0x1] ss:$0 sm:$0xff] }
 0xc53   :  { %v4310_v51 = vmul.f32 -1.442695, %v5128_v20 }
 0xc54   :  { %5280 = vpow2.f32 %v4309_v49 }
 0xc55   :  { %5282 = vpow2.f32 %v4310_v51 }
 0xc5e   :  { %v5281_v53 = vpop.eup %5280 }
 0xc5f   :  { %v3188_v50 = vadd.f32 1.0, %v5281_v53  ;;  %v5283_v55 = vpop.eup %5282 }
 0xc60   :  { %v3189_v22 = vadd.f32 1.0, %v5283_v55 }
 0xc61   :  { %5284 = vrcp.f32 %v3188_v50 }
 0xc62   :  { %5286 = vrcp.f32 %v3189_v22 }
 0xc6b   :  { %v5285_v60 = vpop.eup %5284 }
 0xc6c   :  { %v3195_v63 = vmul.f32 %v5285_v60, %v2870_v5  ;;  %v5287_v38 = vpop.eup %5286 }
 0xc6d   :  { %v3198_v4 = vsub.f32 1.0, %v5287_v38  ;;  %v3200_v15 = vmul.f32 %v5287_v38, %v5869_v54 }
 0xc6e   :  { %v3196_v27 = vadd.f32 %v3195_v63, %v3194_v62 }
 0xc70   :  { %5288 = vtanh.f32 %v3196_v27 }
 0xc7a   :  { %v5289_v8 = vpop.eup %5288 }
 0xc7b   :  { %v3199_v14 = vmul.f32 %v5289_v8, %v3198_v4  ;;  %v5993_v8 = vld [vmem:[%s6063_s2 + $0x3] ss:$0 sm:$0xff] }
 0xc7d   :  { %v5928_v29 = vadd.f32 %v3200_v15, %v3199_v14 }
 0xc7f   :  { %4311 = vmatmul.mubr.msk.f32.vlgmr.msra.gmra.mrb[26].mxu0 %vm363_vm2, %v5928_v29  ;;  %4687 = vmatmul.mubr.msk.f32.vlgmr.msra.gmra.mrb[46].mxu1 %vm363_vm2, %v5928_v29 }
 0xc80   :  { %5024 = vmatpush1.bf16.msra.mxu0 %v5438_v9  ;;  %5031 = vmatpush3.bf16.msra.mxu1 %v5520_v45 }
 0xc81   :  { %5026 = vmatprep.subr.bf16.mxu0 %v5445_v13  ;;  %5032 = vmatprep.subr.bf16.mxu1 %v5384_v33 }
 0xc82   :  { %3410 = vmatprep.mubr.f32.mxu0 %v5383_v0  ;;  %4697 = vmatprep.mubr.msk.f32.mxu1 %vm5385_vm1, %v5383_v0 }
 0xc84   :  { %5028 = vmatpush1.bf16.msra.mxu0 %v5448_v16  ;;  %5034 = vmatpush3.bf16.msra.mxu1 %v5527_v48 }
 0xc85   :  { %5036 = vmatprep.subr.bf16.mxu0 %v5535_v52  ;;  %5043 = vmatprep.subr.bf16.mxu1 %v5384_v33 }
 0xc87   :  { %4313 = vmatmul.mubr.msk.f32.vlgmr.msra.gmra.mrb[12].mxu0 %vm363_vm2, %v5906_v41  ;;  %4698 = vmatmul.mubr.msk.f32.vlgmr.msra.gmra.mrb[48].mxu1 %vm363_vm2, %v5906_v41 }
 0xc88   :  { %5038 = vmatpush1.bf16.msra.mxu0 %v5537_v56  ;;  %5045 = vmatpush3.bf16.msra.mxu1 %v5539_v57 }
 0xc89   :  { %5040 = vmatprep.subr.bf16.mxu0 %v5542_v61  ;;  %5046 = vmatprep.subr.bf16.mxu1 %v5384_v33 }
 0xc8a   :  { %3576 = vmatprep.mubr.f32.mxu0 %v5383_v0  ;;  %4708 = vmatprep.mubr.msk.f32.mxu1 %vm5385_vm1, %v5383_v0 }
 0xc8c   :  { %5042 = vmatpush1.bf16.msra.mxu0 %v5546_v2  ;;  %5048 = vmatpush3.bf16.msra.mxu1 %v5548_v3 }
 0xc8d   :  { %5050 = vmatprep.subr.bf16.mxu0 %v5459_v21  ;;  %5057 = vmatprep.subr.bf16.mxu1 %v5384_v33 }
 0xd52   :  { %v3342_v58 = vpop.f32.mrb[46].mxu1 }
 0xd53   :  { %v4688_v54 = vpop.f32.mrb[47].mxu1 }
 0xd5a   :  { %v3412_v6 = vpop.f32.mrb[12].mxu0  ;;  %v3483_v1 = vpop.f32.mrb[48].mxu1 }
 0xd5b   :  { %v5111_v18 = vadd.f32 %v3412_v6, %v5584_v37  ;;  %v3414_v23 = vpop.f32.mrb[13].mxu0  ;;  %v4699_v25 = vpop.f32.mrb[49].mxu1  ;;  %v3501_v44 = vadd.f32 %v5965_v46, %v3483_v1 }
 0xd5c   :  { %v5112_v31 = vadd.f32 %v3414_v23, %v5587_v43 }
 0xd5d   :  { %v4315_v12 = vmul.f32 -1.442695, %v5111_v18 }
 0xd5e   :  { %v4316_v19 = vmul.f32 -1.442695, %v5112_v31 }
 0xd5f   :  { %5290 = vpow2.f32 %v4315_v12 }
 0xd60   :  { %5292 = vpow2.f32 %v4316_v19 }
 0xd69   :  { %v5291_v36 = vpop.eup %5290 }
 0xd6a   :  { %v3495_v24 = vadd.f32 1.0, %v5291_v36  ;;  %v5293_v21 = vpop.eup %5292 }
 0xd6b   :  { %v3496_v59 = vadd.f32 1.0, %v5293_v21 }
 0xd6c   :  { %5294 = vrcp.f32 %v3495_v24 }
 0xd6d   :  { %5296 = vrcp.f32 %v3496_v59 }
 0xd76   :  { %v5295_v47 = vpop.eup %5294 }
 0xd77   :  { %v3502_v49 = vmul.f32 %v5295_v47, %v3501_v44  ;;  %v5297_v51 = vpop.eup %5296 }
 0xd78   :  { %v3505_v53 = vsub.f32 1.0, %v5297_v51  ;;  %v3507_v22 = vmul.f32 %v5297_v51, %v5906_v41  ;;  %v341_v51 = vld [vmem:[#allocation2 + $0x150] sm:$0xff] }
 0xd79   :  { %v3503_v20 = vadd.f32 %v3502_v49, %v5580_v34 }
 0xd7b   :  { %5298 = vtanh.f32 %v3503_v20  ;;  %v340_v20 = vld [vmem:[#allocation2 + $0x138] sm:$0xff] }
 0xd85   :  { %v5299_v50 = vpop.eup %5298 }
 0xd86   :  { %v3506_v55 = vmul.f32 %v5299_v50, %v3505_v53 }
 0xd88   :  { %v5970_v5 = vadd.f32 %v3507_v22, %v3506_v55 }
 0xd8a   :  { %4317 = vmatmul.mubr.msk.f32.vlgmr.msra.gmra.mrb[26].mxu0 %vm363_vm2, %v5970_v5  ;;  %4709 = vmatmul.mubr.msk.f32.vlgmr.msra.gmra.mrb[50].mxu1 %vm363_vm2, %v5970_v5 }
 0xd8b   :  { %5052 = vmatpush1.bf16.msra.mxu0 %v5465_v26  ;;  %5059 = vmatpush3.bf16.msra.mxu1 %v5506_v39 }
 0xd8c   :  { %5054 = vmatprep.subr.bf16.mxu0 %v5469_v28  ;;  %5060 = vmatprep.subr.bf16.mxu1 %v5384_v33 }
 0xd8d   :  { %3742 = vmatprep.mubr.f32.mxu0 %v5383_v0  ;;  %4719 = vmatprep.mubr.msk.f32.mxu1 %vm5385_vm1, %v5383_v0 }
 0xd8f   :  { %5056 = vmatpush1.bf16.msra.mxu0 %v5480_v32  ;;  %5062 = vmatpush3.bf16.msra.mxu1 %v5512_v42 }
 0xd90   :  { %5064 = vmatprep.subr.bf16.mxu0 %v5435_v7  ;;  %5071 = vmatprep.subr.bf16.mxu1 %v5384_v33  ;;  %v3343_v7 = vadd.f32 %v3342_v58, %v5624_v35 }
 0xe5d   :  { %v3578_v26 = vpop.f32.mrb[26].mxu0  ;;  %v3649_v34 = vpop.f32.mrb[50].mxu1 }
 0xe5e   :  { %v5129_v39 = vadd.f32 %v3578_v26, %v5616_v17  ;;  %v3580_v28 = vpop.f32.mrb[27].mxu0  ;;  %v4710_v41 = vpop.f32.mrb[51].mxu1  ;;  %v3667_v14 = vadd.f32 %v5993_v8, %v3649_v34 }
 0xe5f   :  { %v5130_v62 = vadd.f32 %v3580_v28, %v5618_v40 }
 0xe60   :  { %v4319_v60 = vmul.f32 -1.442695, %v5129_v39 }
 0xe61   :  { %v4320_v63 = vmul.f32 -1.442695, %v5130_v62 }
 0xe62   :  { %5300 = vpow2.f32 %v4319_v60 }
 0xe63   :  { %5302 = vpow2.f32 %v4320_v63 }
 0xe6c   :  { %v5301_v27 = vpop.eup %5300 }
 0xe6d   :  { %v3661_v32 = vadd.f32 1.0, %v5301_v27  ;;  %v5303_v42 = vpop.eup %5302 }
 0xe6e   :  { %v3662_v38 = vadd.f32 1.0, %v5303_v42 }
 0xe6f   :  { %5304 = vrcp.f32 %v3661_v32 }
 0xe70   :  { %5306 = vrcp.f32 %v3662_v38 }
 0xe79   :  { %v5305_v4 = vpop.eup %5304 }
 0xe7a   :  { %v3668_v15 = vmul.f32 %v5305_v4, %v3343_v7  ;;  %v5307_v6 = vpop.eup %5306 }
 0xe7b   :  { %v3671_v1 = vsub.f32 1.0, %v5307_v6  ;;  %v3673_v25 = vmul.f32 %v5307_v6, %v5928_v29 }
 0xe7c   :  { %v3669_v54 = vadd.f32 %v3668_v15, %v3667_v14 }
 0xe7e   :  { %5308 = vtanh.f32 %v3669_v54 }
 0xe88   :  { %v5309_v18 = vpop.eup %5308 }
 0xe89   :  { %v3672_v23 = vmul.f32 %v5309_v18, %v3671_v1 }
 0xe8b   :  { %v5997_v12 = vadd.f32 %v3673_v25, %v3672_v23 }
 0xe8d   :  { %4321 = vmatmul.mubr.msk.f32.vlgmr.msra.gmra.mrb[28].mxu0 %vm363_vm2, %v5997_v12  ;;  %4720 = vmatmul.mubr.msk.f32.vlgmr.msra.gmra.mrb[52].mxu1 %vm363_vm2, %v5997_v12 }
 0xe8e   :  { %5066 = vmatpush1.bf16.msra.mxu0 %v5438_v9  ;;  %5073 = vmatpush3.bf16.msra.mxu1 %v5520_v45  ;;  %v196_v45 = vadd.f32 %v5564_v11, %v5587_v43 }
 0xe8f   :  { %5068 = vmatprep.subr.bf16.mxu0 %v5445_v13  ;;  %5074 = vmatprep.subr.bf16.mxu1 %v5384_v33 }
 0xe90   :  { %3883 = vmatprep.mubr.f32.mxu0 %v5383_v0  ;;  %4730 = vmatprep.mubr.msk.f32.mxu1 %vm5385_vm1, %v5383_v0 }
 0xe92   :  { %5070 = vmatpush1.bf16.msra.mxu0 %v5448_v16  ;;  %5076 = vmatpush3.bf16.msra.mxu1 %v5527_v48  ;;  %v194_v16 = vadd.f32 %v5562_v10, %v5584_v37 }
 0xe93   :  { %5078 = vmatprep.subr.bf16.mxu0 %v5535_v52  ;;  %5085 = vmatprep.subr.bf16.mxu1 %v5384_v33 }
 0xe95   :  { %4323 = vmatmul.mubr.msk.f32.vlgmr.msra.gmra.mrb[30].mxu0 %vm363_vm2, %v5970_v5  ;;  %4731 = vmatmul.mubr.msk.f32.vlgmr.msra.gmra.mrb[54].mxu1 %vm363_vm2, %v5970_v5 }
 0xe96   :  { %5080 = vmatpush1.bf16.msra.mxu0 %v5537_v56  ;;  %5087 = vmatpush3.bf16.msra.mxu1 %v5539_v57 }
 0xe97   :  { %5082 = vmatprep.subr.bf16.mxu0 %v5542_v61  ;;  %5088 = vmatprep.subr.bf16.mxu1 %v5384_v33 }
 0xe98   :  { %4049 = vmatprep.mubr.f32.mxu0 %v5383_v0  ;;  %4741 = vmatprep.mubr.msk.f32.mxu1 %vm5385_vm1, %v5383_v0 }
 0xe9a   :  { %5084 = vmatpush1.bf16.msra.mxu0 %v5546_v2  ;;  %5090 = vmatpush3.bf16.msra.mxu1 %v5548_v3 }
 0xe9b   :  { %5091 = vmatprep.subr.bf16.mxu0 %v5384_v33 }
 0xf60   :  { %v3815_v9 = vpop.f32.mrb[52].mxu1 }
 0xf61   :  { %v4721_v13 = vpop.f32.mrb[53].mxu1 }
 0xf68   :  { %v3885_v48 = vpop.f32.mrb[30].mxu0  ;;  %v3956_v52 = vpop.f32.mrb[54].mxu1 }
 0xf69   :  { %v3960_v56 = vadd.f32 %v3885_v48, %v194_v16  ;;  %v3887_v57 = vpop.f32.mrb[31].mxu0  ;;  %v4732_v61 = vpop.f32.mrb[55].mxu1  ;;  %v3974_v10 = vadd.f32 %v5965_v46, %v3956_v52  ;;  %v339_v46 = vld [vmem:[#allocation2 + $0x120] sm:$0xff] }
 0xf6a   :  { %v3961_v29 = vadd.f32 %v3887_v57, %v196_v45  ;;  %v5092_v53 = vpack.c.bf16 %v340_v20, %v339_v46 }
 0xf6b   :  { %v4325_v58 = vmul.f32 -1.442695, %v3960_v56 }
 0xf6c   :  { %v4326_v2 = vmul.f32 -1.442695, %v3961_v29 }
 0xf6d   :  { %5310 = vpow2.f32 %v4325_v58 }
 0xf6e   :  { %5312 = vpow2.f32 %v4326_v2 }
 0xf77   :  { %v5311_v3 = vpop.eup %5310 }
 0xf78   :  { %v3968_v31 = vadd.f32 1.0, %v5311_v3  ;;  %v5313_v19 = vpop.eup %5312 }
 0xf79   :  { %v3969_v36 = vadd.f32 1.0, %v5313_v19 }
 0xf7a   :  { %5314 = vrcp.f32 %v3968_v31 }
 0xf7b   :  { %5316 = vrcp.f32 %v3969_v36 }
 0xf84   :  { %v5315_v37 = vpop.eup %5314 }
 0xf85   :  { %v3975_v24 = vmul.f32 %v5315_v37, %v3974_v10  ;;  %v5317_v43 = vpop.eup %5316 }
 0xf86   :  { %v3978_v21 = vsub.f32 1.0, %v5317_v43  ;;  %v3980_v47 = vmul.f32 %v5317_v43, %v5970_v5 }
 0xf87   :  { %v3976_v11 = vadd.f32 %v3975_v24, %v5578_v30  ;;  %v342_v30 = vld [vmem:[#allocation2 + $0x168] sm:$0xff] }
 0xf88   :  { %v5095_v50 = vpack.c.bf16 %v342_v30, %v341_v51 }
 0xf89   :  { %5318 = vtanh.f32 %v3976_v11 }
 0xf93   :  { %v5319_v59 = vpop.eup %5318 }
 0xf94   :  { %v3979_v44 = vmul.f32 %v5319_v59, %v3978_v21 }
 0xf96   :  { %v3981_v49 = vadd.f32 %v3980_v47, %v3979_v44 }
 0xf98   :  { %4327 = vmatmul.mubr.msk.f32.vlgmr.msra.gmra.mrb[28].mxu0 %vm363_vm2, %v3981_v49  ;;  %4742 = vmatmul.mubr.msk.f32.vlgmr.msra.gmra.mrb[56].mxu1 %vm363_vm2, %v3981_v49 }
 0xf99   :  { %4752 = vmatprep.mubr.msk.f32.mxu0 %vm5385_vm1, %v5383_v0  ;;  %5093 = vmatpush3.bf16.msra.mxu0 %v5092_v53 }
 0xf9a   :  { %5094 = vmatprep.subr.bf16.mxu0 %v5384_v33  ;;  %v3816_v33 = vadd.f32 %v3815_v9, %v5624_v35  ;;  %v4148_v35 = vld [vmem:[%s6063_s2 + $0x4] ss:$0 sm:$0xff] }
 0xf9d   :  { %5096 = vmatpush3.bf16.msra.mxu0 %v5095_v50 }
0x106b   :  { %v4051_v55 = vpop.f32.mrb[28].mxu0  ;;  %v4122_v22 = vpop.f32.mrb[56].mxu1 }
0x106c   :  { %v5131_v5 = vadd.f32 %v4051_v55, %v5616_v17  ;;  %v4053_v26 = vpop.f32.mrb[29].mxu0  ;;  %v4743_v34 = vpop.f32.mrb[57].mxu1  ;;  %v4140_v32 = vadd.f32 %v5993_v8, %v4122_v22 }
0x106d   :  { %v5132_v28 = vadd.f32 %v4053_v26, %v5618_v40 }
0x106e   :  { %v4329_v39 = vmul.f32 -1.442695, %v5131_v5 }
0x106f   :  { %v4330_v0 = vmul.f32 -1.442695, %v5132_v28 }
0x1070   :  { %5320 = vpow2.f32 %v4329_v39 }
0x1071   :  { %5322 = vpow2.f32 %v4330_v0 }
0x107a   :  { %v5321_v41 = vpop.eup %5320 }
0x107b   :  { %v4134_v60 = vadd.f32 1.0, %v5321_v41  ;;  %v5323_v62 = vpop.eup %5322 }
0x107c   :  { %v4135_v63 = vadd.f32 1.0, %v5323_v62 }
0x107d   :  { %5324 = vrcp.f32 %v4134_v60 }
0x107e   :  { %5326 = vrcp.f32 %v4135_v63 }
0x1087   :  { %v5325_v27 = vpop.eup %5324 }
0x1088   :  { %v4141_v42 = vmul.f32 %v5325_v27, %v3816_v33  ;;  %v5327_v38 = vpop.eup %5326 }
0x1089   :  { %v4144_v7 = vsub.f32 1.0, %v5327_v38  ;;  %v4146_v14 = vmul.f32 %v5327_v38, %v5997_v12 }
0x108a   :  { %v4142_v17 = vadd.f32 %v4141_v42, %v4140_v32 }
0x108c   :  { %5328 = vtanh.f32 %v4142_v17 }
0x1096   :  { %v5329_v40 = vpop.eup %5328 }
0x1097   :  { %v4145_v4 = vmul.f32 %v5329_v40, %v4144_v7 }
0x1099   :  { %v4147_v15 = vadd.f32 %v4146_v14, %v4145_v4 }
0x109b   :  { %4753 = vmatmul.mubr.msk.f32.vlgmr.msra.gmra.mrb[32].mxu0 %vm363_vm2, %v4147_v15 }
0x116e   :  { %v4218_v8 = vpop.f32.mrb[32].mxu0 }
0x116f   :  { %v4219_v54 = vadd.f32 %v4218_v8, %v4148_v35  ;;  %v4754_v6 = vpop.f32.mrb[33].mxu0 }
0x1171   :  { %4222 = vst [vmem:[#allocation5] sm:$0xff] %v4219_v54 }
0x1172   :  { %5365 = shalt.err (!%p5362_p12)
}
0x1173   :  { %s5366_s14 = scalar_lea.hbm %s6065_s4, 128 }
0x1174   :  { %p5367_p13 = scmp.ne.s32.totalorder %s6065_s4, %s5366_s14  ;;  %p5370_p0 = scmp.lt.u32.totalorder %s5366_s14, %s6065_s4 }
0x1176   :  { %p5372_p1 = pnand %p5370_p0, %p5367_p13 }
0x1178   :  { %5375 = shalt.err (!%p5372_p1)
}
0x1179   :  { %4232 = dma.vmem_to_hbm [thread:$0]  %s4230_s10, 128, %s6065_s4, [#allocation4]  }
0x117a   :  { %5378 = dma.done.wait [#allocation4], 128  }
0x117b   :  { %5379 = vsyncadd [#allocation4], 4294967168 }
0x117c   :  { %4236 = vsyncpa [#allocation3], 1 }
0x117d   :  { %4237 = vsyncpa [#allocation4], 1 }

</bundles_post_ra>
